<compile_context>
chip_gen: v6e
topology: v6e:2x2x1
jax: 0.10.0
libtpu: 0.0.40
codegen_flags: <defaults>
</compile_context>

<pallas_src>
import numpy as np
import jax
import jax.numpy as jnp
from jax.experimental import pallas as pl
from jax.experimental.pallas import tpu as pltpu

_LANE = 128
_TILE_E = 256  # rows per grid step (keeps live f32 intermediates within vregs)


def _ru(v, m):
    return ((v + m - 1) // m) * m


def _pad_to(a, rows, cols, dtype=None):
    out = jnp.pad(a, ((0, rows - a.shape[0]), (0, cols - a.shape[1])))
    if dtype is not None:
        out = out.astype(dtype)
    return out


# ----------------------------- Pallas kernels -----------------------------

def _gather_rows(src_col, dst_col, table_bf16):
    """Gather rows of a VMEM-resident table via one-hot MXU matmuls."""
    te = src_col.shape[0]
    npad = table_bf16.shape[0]
    n_iota = jax.lax.broadcasted_iota(jnp.int32, (te, npad), 1)
    oh_src = jnp.where(n_iota == src_col, 1.0, 0.0).astype(jnp.bfloat16)
    oh_dst = jnp.where(n_iota == dst_col, 1.0, 0.0).astype(jnp.bfloat16)
    x1 = jnp.dot(oh_src, table_bf16, preferred_element_type=jnp.float32)
    x2 = jnp.dot(oh_dst, table_bf16, preferred_element_type=jnp.float32)
    return x1, x2  # exact row selection, f32


def _fused_concat_kernel(src_ref, dst_ref, x_ref, ea_ref,
                         nw_ref, nb_ref, ew_ref, eb_ref,
                         w1a_ref, w1b_ref, w1c_ref, b1_ref,
                         w2_ref, b2_ref,
                         out_ref, eenc_ref):
    f32, bf16 = jnp.float32, jnp.bfloat16
    # node encoder on the resident (padded) node table
    xp = jnp.dot(x_ref[...], nw_ref[...], preferred_element_type=f32) + nb_ref[...]
    xp = xp.astype(bf16)                                            # [Np, Hp]
    # edge encoder for this tile of edges
    eenc = jnp.dot(ea_ref[...], ew_ref[...], preferred_element_type=f32) + eb_ref[...]
    eenc_ref[...] = eenc.astype(eenc_ref.dtype)
    eenc_bf = eenc.astype(bf16)
    # x[edge_index[0]], x[edge_index[1]] via one-hot matmuls (no dynamic gather)
    x1, x2 = _gather_rows(src_ref[...], dst_ref[...], xp)
    x1 = x1.astype(bf16)
    x2 = x2.astype(bf16)
    # concat -> Linear(3H,3H) realized with split weights (no lane-axis concat)
    h = (jnp.dot(x1, w1a_ref[...], preferred_element_type=f32)
         + jnp.dot(x2, w1b_ref[...], preferred_element_type=f32)
         + jnp.dot(eenc_bf, w1c_ref[...], preferred_element_type=f32)
         + b1_ref[...])
    h = jnp.maximum(h, 0.0).astype(bf16)
    out = jnp.dot(h, w2_ref[...], preferred_element_type=f32) + b2_ref[...]
    out_ref[...] = out.astype(out_ref.dtype)


def _fused_add_kernel(src_ref, dst_ref, x_ref, ea_ref,
                      nw_ref, nb_ref, ew_ref, eb_ref,
                      out_ref, eenc_ref):
    f32, bf16 = jnp.float32, jnp.bfloat16
    xp = jnp.dot(x_ref[...], nw_ref[...], preferred_element_type=f32) + nb_ref[...]
    xp = xp.astype(bf16)
    eenc = jnp.dot(ea_ref[...], ew_ref[...], preferred_element_type=f32) + eb_ref[...]
    eenc_ref[...] = eenc.astype(eenc_ref.dtype)
    x1, x2 = _gather_rows(src_ref[...], dst_ref[...], xp)
    out_ref[...] = (x1 + x2 + eenc).astype(out_ref.dtype)


# ----------------------------- fused wrapper -----------------------------

def fused_feature_encoder(x, edge_attr, edge_index, params, mode, hid_dim,
                          tile_e=_TILE_E):
    """Returns (tuple_x [E, H] f32, edge_enc [E, H] f32)."""
    N, _ = x.shape
    E, _ = edge_attr.shape
    H = hid_dim
    Np = _ru(max(N, 1), _LANE)
    Dp = _ru(x.shape[1], _LANE)
    Dep = _ru(edge_attr.shape[1], _LANE)
    Hp = _ru(H, _LANE)
    H3p = _ru(3 * H, _LANE)
    TE = tile_e
    Ep = _ru(max(E, 1), TE)

    x_p = _pad_to(x, Np, Dp, jnp.bfloat16)
    ea_p = _pad_to(edge_attr, Ep, Dep, jnp.bfloat16)
    src = _pad_to(edge_index[0].reshape(-1, 1).astype(jnp.int32), Ep, 1)
    dst = _pad_to(edge_index[1].reshape(-1, 1).astype(jnp.int32), Ep, 1)

    def row_spec(cols):
        return pl.BlockSpec((TE, cols), lambda i: (i, 0))

    def res_spec(rows, cols):
        return pl.BlockSpec((rows, cols), lambda i: (0, 0))

    in_specs = [
        row_spec(1), row_spec(1),             # src, dst indices
        res_spec(Np, Dp), row_spec(Dep),      # node table, edge_attr tile
        res_spec(Dp, Hp), res_spec(1, Hp),    # node_w, node_b
        res_spec(Dep, Hp), res_spec(1, Hp),   # edge_w, edge_b
    ]
    args = [src, dst, x_p, ea_p,
            params['node_w'], params['node_b'],
            params['edge_w'], params['edge_b']]

    if mode == 'concat':
        in_specs += [res_spec(Hp, H3p), res_spec(Hp, H3p), res_spec(Hp, H3p),
                     res_spec(1, H3p), res_spec(H3p, Hp), res_spec(1, Hp)]
        args += [params['w1a'], params['w1b'], params['w1c'],
                 params['b1'], params['w2'], params['b2']]
        kernel = _fused_concat_kernel
    else:
        kernel = _fused_add_kernel

    out_specs = (pl.BlockSpec((TE, Hp), lambda i: (i, 0)),
                 pl.BlockSpec((TE, Hp), lambda i: (i, 0)))
    out_shape = (jax.ShapeDtypeStruct((Ep, Hp), jnp.float32),
                 jax.ShapeDtypeStruct((Ep, Hp), jnp.float32))

    tuple_x, edge_enc = pl.pallas_call(
        kernel,
        out_shape=out_shape,
        grid=(Ep // TE,),
        in_specs=in_specs,
        out_specs=out_specs,
        compiler_params=pltpu.CompilerParams(
            dimension_semantics=("parallel",),
            vmem_limit_bytes=32 * 1024 * 1024),
    )(*args)

    return tuple_x[:E, :H], edge_enc[:E, :H]


# ----------------------------- plain-JAX glue -----------------------------

def cumsum_pad0(num):
    # ret[0] = 0; ret[1:] = cumsum(num[:-1])
    return jnp.concatenate(
        [jnp.zeros((1,), dtype=num.dtype), jnp.cumsum(num[:-1])], axis=0)


def num2batch(num_edge, total):
    # total must be static (== sum(num_edge)); true for the synthetic batch.
    # TODO(synk): like the PyTorch original, a graph with zero edges collapses
    #   duplicate offsets; acceptable here since it mirrors the reference code.
    offset = cumsum_pad0(num_edge)
    batch = jnp.zeros((total,), dtype=offset.dtype)
    batch = batch.at[offset].set(1)
    batch = batch.at[0].set(0)
    return jnp.cumsum(batch)


# ----------------------------- module in JAX -----------------------------

class FeatureEncoder:
    """JAX/Pallas port of the kTransformer FeatureEncoder (k=2)."""

    def __init__(self, dim_in, dim_edge_in, hid_dim, mode, key):
        assert mode in ('add', 'concat')
        self.mode = mode
        self.hid_dim = hid_dim
        self.dim_in = hid_dim
        kn, ke, k1, k2 = jax.random.split(key, 4)
        H = hid_dim
        h3 = 3 * H
        # raw f32 parameters (reference path uses these)
        self.node_w = jax.random.normal(kn, (dim_in, H), jnp.float32) * 0.1
        self.node_b = jnp.zeros((1, H), jnp.float32)
        self.edge_w = jax.random.normal(ke, (dim_edge_in, H), jnp.float32) * 0.1
        self.edge_b = jnp.zeros((1, H), jnp.float32)
        self.w1 = jax.random.normal(k1, (h3, h3), jnp.float32) * 0.05
        self.b1 = jnp.zeros((1, h3), jnp.float32)
        self.w2 = jax.random.normal(k2, (h3, H), jnp.float32) * 0.05
        self.b2 = jnp.zeros((1, H), jnp.float32)

        # pre-padded, bf16-cast kernel parameters (lane-dense, MXU-native)
        Dp = _ru(dim_in, _LANE)
        Dep = _ru(dim_edge_in, _LANE)
        Hp = _ru(H, _LANE)
        H3p = _ru(h3, _LANE)
        self.params = {
            'node_w': _pad_to(self.node_w, Dp, Hp, jnp.bfloat16),
            'node_b': _pad_to(self.node_b, 1, Hp),
            'edge_w': _pad_to(self.edge_w, Dep, Hp, jnp.bfloat16),
            'edge_b': _pad_to(self.edge_b, 1, Hp),
            'w1a': _pad_to(self.w1[:H], Hp, H3p, jnp.bfloat16),
            'w1b': _pad_to(self.w1[H:2 * H], Hp, H3p, jnp.bfloat16),
            'w1c': _pad_to(self.w1[2 * H:], Hp, H3p, jnp.bfloat16),
            'b1': _pad_to(self.b1, 1, H3p),
            'w2': _pad_to(self.w2, H3p, Hp, jnp.bfloat16),
            'b2': _pad_to(self.b2, 1, Hp),
        }

    def __call__(self, batch):
        tuple_x, edge_enc = fused_feature_encoder(
            batch['x'], batch['edge_attr'], batch['edge_index'],
            self.params, self.mode, self.hid_dim)
        batch['edge_attr'] = edge_enc
        batch['x'] = tuple_x
        batch['batch_original'] = batch['batch']
        total_tuples = int(batch['edge_index'].shape[1])
        batch['batch_tuple'] = num2batch(batch['num_edge_per_graph'], total_tuples)
        batch['batch'] = batch['batch_tuple']
        return batch


# ----------------------------- reference (pure JAX, same numerics) -----------------------------

def reference_forward(enc: FeatureEncoder, batch_in):
    f32, bf16 = jnp.float32, jnp.bfloat16
    b = dict(batch_in)
    H = enc.hid_dim
    xp = jnp.dot(b['x'].astype(bf16), enc.node_w.astype(bf16),
                 preferred_element_type=f32) + enc.node_b
    xp_bf = xp.astype(bf16)
    eenc = jnp.dot(b['edge_attr'].astype(bf16), enc.edge_w.astype(bf16),
                   preferred_element_type=f32) + enc.edge_b
    x1 = xp_bf[b['edge_index'][0]]
    x2 = xp_bf[b['edge_index'][1]]
    if enc.mode == 'concat':
        w1 = enc.w1.astype(bf16)
        h = (jnp.dot(x1, w1[:H], preferred_element_type=f32)
             + jnp.dot(x2, w1[H:2 * H], preferred_element_type=f32)
             + jnp.dot(eenc.astype(bf16), w1[2 * H:], preferred_element_type=f32)
             + enc.b1)
        h = jnp.maximum(h, 0.0).astype(bf16)
        out = jnp.dot(h, enc.w2.astype(bf16), preferred_element_type=f32) + enc.b2
    else:
        out = x1.astype(f32) + x2.astype(f32) + eenc
    return out, eenc


# ----------------------------- main -----------------------------

if __name__ == "__main__":
    key = jax.random.PRNGKey(0)
    k_x, k_e, k_idx, k_enc = jax.random.split(key, 4)

    # small synthetic graph batch: 2 graphs, 8 nodes each, 12 edges each
    N, E = 16, 24
    dim_in, dim_edge_in, hid = 16, 16, 32

    x = jax.random.normal(k_x, (N, dim_in), jnp.float32)
    edge_attr = jax.random.normal(k_e, (E, dim_edge_in), jnp.float32)
    edge_index = jax.random.randint(k_idx, (2, E), 0, N, dtype=jnp.int32)
    node_batch = jnp.repeat(jnp.arange(2, dtype=jnp.int32), N // 2)
    num_edge_per_graph = jnp.array([12, 12], dtype=jnp.int32)

    for mode in ('concat', 'add'):
        batch = {
            'x': x,
            'edge_attr': edge_attr,
            'edge_index': edge_index,
            'batch': node_batch,
            'num_edge_per_graph': num_edge_per_graph,
        }
        enc = FeatureEncoder(dim_in, dim_edge_in, hid, mode, k_enc)
        out_batch = enc(dict(batch))
        jax.block_until_ready(out_batch['x'])

        ref_x, ref_eenc = reference_forward(enc, batch)
        np.testing.assert_allclose(np.asarray(out_batch['x']), np.asarray(ref_x),
                                   rtol=1e-2, atol=1e-3)
        np.testing.assert_allclose(np.asarray(out_batch['edge_attr']),
                                   np.asarray(ref_eenc), rtol=1e-2, atol=1e-3)
        assert out_batch['x'].shape == (E, hid)
        assert out_batch['edge_attr'].shape == (E, hid)
        assert out_batch['batch'].shape == (E,)
        assert int(out_batch['batch'][-1]) == 1  # second graph's tuples

    print("KERNEL_OK")
</pallas_src>

<mosaic_0001>
module attributes {stable_mosaic.version = 11 : i64} {
  func.func @_fused_concat_kernel(%arg0: i32, %arg1: memref<256x1xi32, #tpu.memory_space<vmem>>, %arg2: memref<256x1xi32, #tpu.memory_space<vmem>>, %arg3: memref<128x128xbf16, #tpu.memory_space<vmem>>, %arg4: memref<256x128xbf16, #tpu.memory_space<vmem>>, %arg5: memref<128x128xbf16, #tpu.memory_space<vmem>>, %arg6: memref<1x128xf32, #tpu.memory_space<vmem>>, %arg7: memref<128x128xbf16, #tpu.memory_space<vmem>>, %arg8: memref<1x128xf32, #tpu.memory_space<vmem>>, %arg9: memref<128x128xbf16, #tpu.memory_space<vmem>>, %arg10: memref<128x128xbf16, #tpu.memory_space<vmem>>, %arg11: memref<128x128xbf16, #tpu.memory_space<vmem>>, %arg12: memref<1x128xf32, #tpu.memory_space<vmem>>, %arg13: memref<128x128xbf16, #tpu.memory_space<vmem>>, %arg14: memref<1x128xf32, #tpu.memory_space<vmem>>, %arg15: memref<256x128xf32, #tpu.memory_space<vmem>>, %arg16: memref<256x128xf32, #tpu.memory_space<vmem>>) attributes {dimension_semantics = [#tpu.dimension_semantics<parallel>], iteration_bounds = array<i64: 1>, scalar_prefetch = 0 : i64, scratch_operands = 0 : i64, tpu.core_type = #tpu.core_type<tc>, window_params = [{transform_indices = @transform_0, window_bounds = array<i64: 256, 1>}, {transform_indices = @transform_1, window_bounds = array<i64: 256, 1>}, {pipeline_mode = #tpu.pipeline_mode<synchronous>, transform_indices = @transform_2, window_bounds = array<i64: 128, 128>}, {transform_indices = @transform_3, window_bounds = array<i64: 256, 128>}, {pipeline_mode = #tpu.pipeline_mode<synchronous>, transform_indices = @transform_4, window_bounds = array<i64: 128, 128>}, {pipeline_mode = #tpu.pipeline_mode<synchronous>, transform_indices = @transform_5, window_bounds = array<i64: 1, 128>}, {pipeline_mode = #tpu.pipeline_mode<synchronous>, transform_indices = @transform_6, window_bounds = array<i64: 128, 128>}, {pipeline_mode = #tpu.pipeline_mode<synchronous>, transform_indices = @transform_7, window_bounds = array<i64: 1, 128>}, {pipeline_mode = #tpu.pipeline_mode<synchronous>, transform_indices = @transform_8, window_bounds = array<i64: 128, 128>}, {pipeline_mode = #tpu.pipeline_mode<synchronous>, transform_indices = @transform_9, window_bounds = array<i64: 128, 128>}, {pipeline_mode = #tpu.pipeline_mode<synchronous>, transform_indices = @transform_10, window_bounds = array<i64: 128, 128>}, {pipeline_mode = #tpu.pipeline_mode<synchronous>, transform_indices = @transform_11, window_bounds = array<i64: 1, 128>}, {pipeline_mode = #tpu.pipeline_mode<synchronous>, transform_indices = @transform_12, window_bounds = array<i64: 128, 128>}, {pipeline_mode = #tpu.pipeline_mode<synchronous>, transform_indices = @transform_13, window_bounds = array<i64: 1, 128>}, {transform_indices = @transform_14, window_bounds = array<i64: 256, 128>}, {transform_indices = @transform_15, window_bounds = array<i64: 256, 128>}]} {
    %c0 = arith.constant 0 : index
    %c0_0 = arith.constant 0 : index
    %0 = vector.load %arg3[%c0, %c0_0] : memref<128x128xbf16, #tpu.memory_space<vmem>>, vector<128x128xbf16>
    %c0_1 = arith.constant 0 : index
    %c0_2 = arith.constant 0 : index
    %1 = vector.load %arg5[%c0_1, %c0_2] : memref<128x128xbf16, #tpu.memory_space<vmem>>, vector<128x128xbf16>
    %cst = arith.constant dense<0.000000e+00> : vector<128x128xf32>
    %2 = tpu.matmul %0, %1, %cst {dimension_numbers = #tpu.dot_dimension_numbers<[1], [0], [0], [1], [0, 0, 1, 1], [], []>} : vector<128x128xbf16>, vector<128x128xbf16>, vector<128x128xf32> -> vector<128x128xf32>
    %c0_3 = arith.constant 0 : index
    %c0_4 = arith.constant 0 : index
    %3 = vector.load %arg6[%c0_3, %c0_4] : memref<1x128xf32, #tpu.memory_space<vmem>>, vector<1x128xf32>
    %4 = vector.broadcast %3 : vector<1x128xf32> to vector<128x128xf32>
    %5 = arith.addf %2, %4 : vector<128x128xf32>
    %6 = arith.truncf %5 : vector<128x128xf32> to vector<128x128xbf16>
    %c0_5 = arith.constant 0 : index
    %c0_6 = arith.constant 0 : index
    %7 = vector.load %arg4[%c0_5, %c0_6] : memref<256x128xbf16, #tpu.memory_space<vmem>>, vector<256x128xbf16>
    %c0_7 = arith.constant 0 : index
    %c0_8 = arith.constant 0 : index
    %8 = vector.load %arg7[%c0_7, %c0_8] : memref<128x128xbf16, #tpu.memory_space<vmem>>, vector<128x128xbf16>
    %cst_9 = arith.constant dense<0.000000e+00> : vector<256x128xf32>
    %9 = tpu.matmul %7, %8, %cst_9 {dimension_numbers = #tpu.dot_dimension_numbers<[1], [0], [0], [1], [0, 0, 1, 1], [], []>} : vector<256x128xbf16>, vector<128x128xbf16>, vector<256x128xf32> -> vector<256x128xf32>
    %c0_10 = arith.constant 0 : index
    %c0_11 = arith.constant 0 : index
    %10 = vector.load %arg8[%c0_10, %c0_11] : memref<1x128xf32, #tpu.memory_space<vmem>>, vector<1x128xf32>
    %11 = vector.broadcast %10 : vector<1x128xf32> to vector<256x128xf32>
    %12 = arith.addf %9, %11 : vector<256x128xf32>
    %c0_12 = arith.constant 0 : index
    %c0_13 = arith.constant 0 : index
    %13 = vector.load %arg16[%c0_12, %c0_13] : memref<256x128xf32, #tpu.memory_space<vmem>>, vector<256x128xf32>
    tpu.vector_store %arg16[%c0_12, %c0_13], %12 {strides = array<i32>} : memref<256x128xf32, #tpu.memory_space<vmem>>, vector<256x128xf32>,
    %14 = arith.truncf %12 : vector<256x128xf32> to vector<256x128xbf16>
    %c0_14 = arith.constant 0 : index
    %c0_15 = arith.constant 0 : index
    %15 = vector.load %arg1[%c0_14, %c0_15] : memref<256x1xi32, #tpu.memory_space<vmem>>, vector<256x1xi32>
    %c0_16 = arith.constant 0 : index
    %c0_17 = arith.constant 0 : index
    %16 = vector.load %arg2[%c0_16, %c0_17] : memref<256x1xi32, #tpu.memory_space<vmem>>, vector<256x1xi32>
    %17 = tpu.iota {dimensions = array<i32: 1>} : vector<256x128xi32>
    %18 = vector.broadcast %15 : vector<256x1xi32> to vector<256x128xi32>
    %19 = arith.cmpi eq, %17, %18 : vector<256x128xi32>
    %cst_18 = arith.constant 1.000000e+00 : f32
    %cst_19 = arith.constant 0.000000e+00 : f32
    %20 = vector.broadcast %cst_18 : f32 to vector<256x128xf32>
    %21 = vector.broadcast %cst_19 : f32 to vector<256x128xf32>
    %22 = arith.select %19, %20, %21 : vector<256x128xi1>, vector<256x128xf32>
    %23 = arith.truncf %22 : vector<256x128xf32> to vector<256x128xbf16>
    %24 = vector.broadcast %16 : vector<256x1xi32> to vector<256x128xi32>
    %25 = arith.cmpi eq, %17, %24 : vector<256x128xi32>
    %cst_20 = arith.constant 1.000000e+00 : f32
    %cst_21 = arith.constant 0.000000e+00 : f32
    %26 = vector.broadcast %cst_20 : f32 to vector<256x128xf32>
    %27 = vector.broadcast %cst_21 : f32 to vector<256x128xf32>
    %28 = arith.select %25, %26, %27 : vector<256x128xi1>, vector<256x128xf32>
    %29 = arith.truncf %28 : vector<256x128xf32> to vector<256x128xbf16>
    %cst_22 = arith.constant dense<0.000000e+00> : vector<256x128xf32>
    %30 = tpu.matmul %23, %6, %cst_22 {dimension_numbers = #tpu.dot_dimension_numbers<[1], [0], [0], [1], [0, 0, 1, 1], [], []>} : vector<256x128xbf16>, vector<128x128xbf16>, vector<256x128xf32> -> vector<256x128xf32>
    %cst_23 = arith.constant dense<0.000000e+00> : vector<256x128xf32>
    %31 = tpu.matmul %29, %6, %cst_23 {dimension_numbers = #tpu.dot_dimension_numbers<[1], [0], [0], [1], [0, 0, 1, 1], [], []>} : vector<256x128xbf16>, vector<128x128xbf16>, vector<256x128xf32> -> vector<256x128xf32>
    %32 = arith.truncf %30 : vector<256x128xf32> to vector<256x128xbf16>
    %33 = arith.truncf %31 : vector<256x128xf32> to vector<256x128xbf16>
    %c0_24 = arith.constant 0 : index
    %c0_25 = arith.constant 0 : index
    %34 = vector.load %arg9[%c0_24, %c0_25] : memref<128x128xbf16, #tpu.memory_space<vmem>>, vector<128x128xbf16>
    %cst_26 = arith.constant dense<0.000000e+00> : vector<256x128xf32>
    %35 = tpu.matmul %32, %34, %cst_26 {dimension_numbers = #tpu.dot_dimension_numbers<[1], [0], [0], [1], [0, 0, 1, 1], [], []>} : vector<256x128xbf16>, vector<128x128xbf16>, vector<256x128xf32> -> vector<256x128xf32>
    %c0_27 = arith.constant 0 : index
    %c0_28 = arith.constant 0 : index
    %36 = vector.load %arg10[%c0_27, %c0_28] : memref<128x128xbf16, #tpu.memory_space<vmem>>, vector<128x128xbf16>
    %cst_29 = arith.constant dense<0.000000e+00> : vector<256x128xf32>
    %37 = tpu.matmul %33, %36, %cst_29 {dimension_numbers = #tpu.dot_dimension_numbers<[1], [0], [0], [1], [0, 0, 1, 1], [], []>} : vector<256x128xbf16>, vector<128x128xbf16>, vector<256x128xf32> -> vector<256x128xf32>
    %38 = arith.addf %35, %37 : vector<256x128xf32>
    %c0_30 = arith.constant 0 : index
    %c0_31 = arith.constant 0 : index
    %39 = vector.load %arg11[%c0_30, %c0_31] : memref<128x128xbf16, #tpu.memory_space<vmem>>, vector<128x128xbf16>
    %cst_32 = arith.constant dense<0.000000e+00> : vector<256x128xf32>
    %40 = tpu.matmul %14, %39, %cst_32 {dimension_numbers = #tpu.dot_dimension_numbers<[1], [0], [0], [1], [0, 0, 1, 1], [], []>} : vector<256x128xbf16>, vector<128x128xbf16>, vector<256x128xf32> -> vector<256x128xf32>
    %41 = arith.addf %38, %40 : vector<256x128xf32>
    %c0_33 = arith.constant 0 : index
    %c0_34 = arith.constant 0 : index
    %42 = vector.load %arg12[%c0_33, %c0_34] : memref<1x128xf32, #tpu.memory_space<vmem>>, vector<1x128xf32>
    %43 = vector.broadcast %42 : vector<1x128xf32> to vector<256x128xf32>
    %44 = arith.addf %41, %43 : vector<256x128xf32>
    %cst_35 = arith.constant 0.000000e+00 : f32
    %45 = vector.broadcast %cst_35 : f32 to vector<256x128xf32>
    %46 = arith.maximumf %44, %45 : vector<256x128xf32>
    %47 = arith.truncf %46 : vector<256x128xf32> to vector<256x128xbf16>
    %c0_36 = arith.constant 0 : index
    %c0_37 = arith.constant 0 : index
    %48 = vector.load %arg13[%c0_36, %c0_37] : memref<128x128xbf16, #tpu.memory_space<vmem>>, vector<128x128xbf16>
    %cst_38 = arith.constant dense<0.000000e+00> : vector<256x128xf32>
    %49 = tpu.matmul %47, %48, %cst_38 {dimension_numbers = #tpu.dot_dimension_numbers<[1], [0], [0], [1], [0, 0, 1, 1], [], []>} : vector<256x128xbf16>, vector<128x128xbf16>, vector<256x128xf32> -> vector<256x128xf32>
    %c0_39 = arith.constant 0 : index
    %c0_40 = arith.constant 0 : index
    %50 = vector.load %arg14[%c0_39, %c0_40] : memref<1x128xf32, #tpu.memory_space<vmem>>, vector<1x128xf32>
    %51 = vector.broadcast %50 : vector<1x128xf32> to vector<256x128xf32>
    %52 = arith.addf %49, %51 : vector<256x128xf32>
    %c0_41 = arith.constant 0 : index
    %c0_42 = arith.constant 0 : index
    %53 = vector.load %arg15[%c0_41, %c0_42] : memref<256x128xf32, #tpu.memory_space<vmem>>, vector<256x128xf32>
    tpu.vector_store %arg15[%c0_41, %c0_42], %52 {strides = array<i32>} : memref<256x128xf32, #tpu.memory_space<vmem>>, vector<256x128xf32>,
    return
  }
  func.func @transform_0(%arg0: i32) -> (i32, i32) {
    %c0_i32 = arith.constant 0 : i32
    %c0_i32_0 = arith.constant 0 : i32
    return %arg0, %c0_i32 : i32, i32
  }
  func.func @transform_1(%arg0: i32) -> (i32, i32) {
    %c0_i32 = arith.constant 0 : i32
    %c0_i32_0 = arith.constant 0 : i32
    return %arg0, %c0_i32 : i32, i32
  }
  func.func @transform_2(%arg0: i32) -> (i32, i32) {
    %c0_i32 = arith.constant 0 : i32
    %c0_i32_0 = arith.constant 0 : i32
    %c0_i32_1 = arith.constant 0 : i32
    return %c0_i32, %c0_i32_0 : i32, i32
  }
  func.func @transform_3(%arg0: i32) -> (i32, i32) {
    %c0_i32 = arith.constant 0 : i32
    %c0_i32_0 = arith.constant 0 : i32
    return %arg0, %c0_i32 : i32, i32
  }
  func.func @transform_4(%arg0: i32) -> (i32, i32) {
    %c0_i32 = arith.constant 0 : i32
    %c0_i32_0 = arith.constant 0 : i32
    %c0_i32_1 = arith.constant 0 : i32
    return %c0_i32, %c0_i32_0 : i32, i32
  }
  func.func @transform_5(%arg0: i32) -> (i32, i32) {
    %c0_i32 = arith.constant 0 : i32
    %c0_i32_0 = arith.constant 0 : i32
    %c0_i32_1 = arith.constant 0 : i32
    return %c0_i32, %c0_i32_0 : i32, i32
  }
  func.func @transform_6(%arg0: i32) -> (i32, i32) {
    %c0_i32 = arith.constant 0 : i32
    %c0_i32_0 = arith.constant 0 : i32
    %c0_i32_1 = arith.constant 0 : i32
    return %c0_i32, %c0_i32_0 : i32, i32
  }
  func.func @transform_7(%arg0: i32) -> (i32, i32) {
    %c0_i32 = arith.constant 0 : i32
    %c0_i32_0 = arith.constant 0 : i32
    %c0_i32_1 = arith.constant 0 : i32
    return %c0_i32, %c0_i32_0 : i32, i32
  }
  func.func @transform_8(%arg0: i32) -> (i32, i32) {
    %c0_i32 = arith.constant 0 : i32
    %c0_i32_0 = arith.constant 0 : i32
    %c0_i32_1 = arith.constant 0 : i32
    return %c0_i32, %c0_i32_0 : i32, i32
  }
  func.func @transform_9(%arg0: i32) -> (i32, i32) {
    %c0_i32 = arith.constant 0 : i32
    %c0_i32_0 = arith.constant 0 : i32
    %c0_i32_1 = arith.constant 0 : i32
    return %c0_i32, %c0_i32_0 : i32, i32
  }
  func.func @transform_10(%arg0: i32) -> (i32, i32) {
    %c0_i32 = arith.constant 0 : i32
    %c0_i32_0 = arith.constant 0 : i32
    %c0_i32_1 = arith.constant 0 : i32
    return %c0_i32, %c0_i32_0 : i32, i32
  }
  func.func @transform_11(%arg0: i32) -> (i32, i32) {
    %c0_i32 = arith.constant 0 : i32
    %c0_i32_0 = arith.constant 0 : i32
    %c0_i32_1 = arith.constant 0 : i32
    return %c0_i32, %c0_i32_0 : i32, i32
  }
  func.func @transform_12(%arg0: i32) -> (i32, i32) {
    %c0_i32 = arith.constant 0 : i32
    %c0_i32_0 = arith.constant 0 : i32
    %c0_i32_1 = arith.constant 0 : i32
    return %c0_i32, %c0_i32_0 : i32, i32
  }
  func.func @transform_13(%arg0: i32) -> (i32, i32) {
    %c0_i32 = arith.constant 0 : i32
    %c0_i32_0 = arith.constant 0 : i32
    %c0_i32_1 = arith.constant 0 : i32
    return %c0_i32, %c0_i32_0 : i32, i32
  }
  func.func @transform_14(%arg0: i32) -> (i32, i32) {
    %c0_i32 = arith.constant 0 : i32
    %c0_i32_0 = arith.constant 0 : i32
    return %arg0, %c0_i32 : i32, i32
  }
  func.func @transform_15(%arg0: i32) -> (i32, i32) {
    %c0_i32 = arith.constant 0 : i32
    %c0_i32_0 = arith.constant 0 : i32
    return %arg0, %c0_i32 : i32, i32
  }
}

</mosaic_0001>

<bundles_post_ra>
// kernel: tpu_custom_call.1
= control target key start
LH: loop header
LB: loop body
LE: loop exit
PB: predicated region body
PF: predicated region fallthrough
CT: control target
= control target key end

     0   :  { %21 = vsyncpa [#allocation3], 0  ;;  %s4589_s0 = inlined_call_operand.vmem [shape: s32[256,1], index: 0, kind: input, shape index: {}]   ;;  %s4590_s1 = inlined_call_operand.vmem [shape: s32[256,1], index: 1, kind: input, shape index: {}]   ;;  %s4591_s2 = inlined_call_operand.vmem [shape: bf16[128,128], index: 2, kind: input, shape index: {}]   ;;  %s4592_s3 = inlined_call_operand.vmem [shape: bf16[256,128], index: 3, kind: input, shape index: {}]   ;;  %s4593_s4 = inlined_call_operand.vmem [shape: bf16[128,128], index: 4, kind: input, shape index: {}]   ;;  %s4594_s5 = inlined_call_operand.vmem [shape: f32[1,128], index: 5, kind: input, shape index: {}]   ;;  %s4595_s6 = inlined_call_operand.vmem [shape: bf16[128,128], index: 6, kind: input, shape index: {}]   ;;  %s4596_s7 = inlined_call_operand.vmem [shape: f32[1,128], index: 7, kind: input, shape index: {}]   ;;  %s4597_s8 = inlined_call_operand.vmem [shape: bf16[128,128], index: 8, kind: input, shape index: {}]   ;;  %s4598_s9 = inlined_call_operand.vmem [shape: bf16[128,128], index: 9, kind: input, shape index: {}]   ;;  %s4599_s10 = inlined_call_operand.vmem [shape: bf16[128,128], index: 10, kind: input, shape index: {}]   ;;  %s4600_s11 = inlined_call_operand.vmem [shape: f32[1,128], index: 11, kind: input, shape index: {}]   ;;  %s4601_s12 = inlined_call_operand.hbm [shape: bf16[128,128], index: 12, kind: input, shape index: {}]   ;;  %s4602_s13 = inlined_call_operand.vmem [shape: f32[1,128], index: 13, kind: input, shape index: {}]   ;;  %s4603_s14 = inlined_call_operand.hbm [shape: f32[256,128], index: 14, kind: output, shape index: {0}]   ;;  %s4604_s15 = inlined_call_operand.hbm [shape: f32[256,128], index: 15, kind: output, shape index: {1}]  }
   0x1   :  { %22 = vsyncpa [#allocation4], 0 }
   0x2   :  { %23 = vsyncpa [#allocation7], 0  ;;  %s3434_s18 = smov [#allocation2]  }
   0x3   :  { %s53_s19 = sshll.u32 %s3434_s18, 4  ;;  %s54_s19 = int_to_ptr.vmem [resolvable:$true] %s53_s19 }
   0x4   :  { %s3376_s20 = scalar_lea.vmem %s54_s19, 1024  ;;  %p3381_p1 = scmp.lt.s32.totalorder %s54_s19, %s54_s19 }
   0x5   :  { %p3377_p0 = scmp.ne.s32.totalorder %s54_s19, %s3376_s20  ;;  %p3382_p2 = scmp.lt.s32.totalorder %s3376_s20, %s3376_s20 }
   0x7   :  { %p3383_p3 = por %p3382_p2, %p3381_p1 }
   0x9   :  { %p3384_p4 = pnand %p3383_p3, %p3377_p0 }
   0xb   :  { %3387 = shalt.err (!%p3384_p4)
}
   0xc   :  { %s3435_s21 = smov 64   ;;  %s3436_s22 = smov 4  }
   0xd   :  { %59 = dma.hbm_to_vmem [thread:$0]  %s4601_s12, 1024, %s54_s19, [#allocation3], %s3435_s21, %s3435_s21, %s3436_s22  }
   0xe   :  { %3428 = dma.done.wait [#allocation3], 1024  }
   0xf   :  { %3429 = vsyncadd [#allocation3], 4294966272  ;;  %v3437_v0 = vmov 0   ;;  %v3296_v1 = vld [vmem:[%s4593_s4 + $0x38] sm:$0xff]   ;;  %v3297_v2 = vld [vmem:[%s4593_s4 + $0x30] sm:$0xff]  }
  0x10   :  { %3295 = vset.pattern.permute.xlu1 %v3437_v0  ;;  %3294 = vset.pattern.permute.xlu0 %v3437_v0  ;;  %v3298_v3 = vld [vmem:[%s4593_s4 + $0x28] sm:$0xff]   ;;  %v3299_v4 = vld [vmem:[%s4593_s4 + $0x20] sm:$0xff]   ;;  %v3300_v6 = vld [vmem:[%s4593_s4 + $0x18] sm:$0xff]  }
  0x11   :  { %2901 = vmatprep.subr.bf16.mxu0 %v3296_v1  ;;  %v3304_v5 = vld [vmem:[%s4591_s2] sm:$0xff]   ;;  %v3301_v7 = vld [vmem:[%s4593_s4 + $0x10] sm:$0xff]   ;;  %v749_v10 = vld [vmem:[%s4590_s1 + $0x18] sm:$0xff] }
  0x12   :  { %2902 = vmatpush3.bf16.msra.mxu0 %v3296_v1  ;;  %2917 = vmatprep.mubr.bf16.mxu0 %v3304_v5  ;;  %v748_v8 = vld [vmem:[%s4590_s1 + $0x10] sm:$0xff]  ;;  %v746_v9 = vld [vmem:[%s4590_s1] sm:$0xff]  ;;  %v747_v11 = vld [vmem:[%s4590_s1 + $0x8] sm:$0xff] }
  0x13   :  { %2903 = vmatprep.subr.bf16.mxu0 %v3297_v2  ;;  %963 = vperm.xlu1 %3295, %v748_v8   ;;  %v3302_v12 = vld [vmem:[%s4593_s4 + $0x8] sm:$0xff]   ;;  %v750_v14 = vld [vmem:[%s4590_s1 + $0x20] sm:$0xff]  ;;  %v753_v16 = vld [vmem:[%s4590_s1 + $0x38] sm:$0xff] }
  0x14   :  { %957 = vperm.xlu0 %3294, %v746_v9   ;;  %v751_v13 = vld [vmem:[%s4590_s1 + $0x28] sm:$0xff]  ;;  %v3303_v15 = vld [vmem:[%s4593_s4] sm:$0xff]   ;;  %v752_v17 = vld [vmem:[%s4590_s1 + $0x30] sm:$0xff] }
  0x15   :  { %v3305_v18 = vld [vmem:[%s4591_s2 + $0x8] sm:$0xff]   ;;  %v754_v20 = vld [vmem:[%s4590_s1 + $0x40] sm:$0xff]  ;;  %v3306_v21 = vld [vmem:[%s4591_s2 + $0x10] sm:$0xff]  }
  0x16   :  { %2904 = vmatpush3.bf16.msra.mxu0 %v3297_v2  ;;  %v755_v19 = vld [vmem:[%s4590_s1 + $0x48] sm:$0xff]  ;;  %v757_v22 = vld [vmem:[%s4590_s1 + $0x58] sm:$0xff]  ;;  %v756_v23 = vld [vmem:[%s4590_s1 + $0x50] sm:$0xff] }
  0x17   :  { %2905 = vmatprep.subr.bf16.mxu0 %v3298_v3  ;;  %966 = vperm.xlu1 %3295, %v749_v10   ;;  %v3307_v24 = vld [vmem:[%s4591_s2 + $0x18] sm:$0xff]   ;;  %v759_v25 = vld [vmem:[%s4590_s1 + $0x68] sm:$0xff]  ;;  %v3308_v26 = vld [vmem:[%s4591_s2 + $0x20] sm:$0xff]  }
  0x18   :  { %960 = vperm.xlu0 %3294, %v747_v11   ;;  %v758_v27 = vld [vmem:[%s4590_s1 + $0x60] sm:$0xff]  ;;  %v3312_v28 = vld [vmem:[%s4595_s6 + $0x38] sm:$0xff]   ;;  %v3313_v29 = vld [vmem:[%s4595_s6 + $0x30] sm:$0xff]  }
  0x19   :  { %2933 = vmatprep.subr.bf16.mxu1 %v3312_v28  ;;  %v761_v30 = vld [vmem:[%s4590_s1 + $0x78] sm:$0xff]  ;;  %v760_v31 = vld [vmem:[%s4590_s1 + $0x70] sm:$0xff]  ;;  %v3314_v32 = vld [vmem:[%s4595_s6 + $0x28] sm:$0xff]  }
  0x1a   :  { %2906 = vmatpush3.bf16.msra.mxu0 %v3298_v3  ;;  %2934 = vmatpush3.bf16.msra.mxu1 %v3312_v28  ;;  %v3309_v33 = vld [vmem:[%s4591_s2 + $0x28] sm:$0xff]   ;;  %v762_v35 = vld [vmem:[%s4590_s1 + $0x80] sm:$0xff]  ;;  %v3310_v36 = vld [vmem:[%s4591_s2 + $0x30] sm:$0xff]  }
  0x1b   :  { %2907 = vmatprep.subr.bf16.mxu0 %v3299_v4  ;;  %972 = vperm.xlu1 %3295, %v751_v13   ;;  %v763_v34 = vld [vmem:[%s4590_s1 + $0x88] sm:$0xff]  ;;  %v3315_v37 = vld [vmem:[%s4595_s6 + $0x20] sm:$0xff]   ;;  %v765_v38 = vld [vmem:[%s4590_s1 + $0x98] sm:$0xff] }
  0x1c   :  { %969 = vperm.xlu0 %3294, %v750_v14   ;;  %2935 = vmatprep.subr.bf16.mxu1 %v3313_v29  ;;  %v764_v39 = vld [vmem:[%s4590_s1 + $0x90] sm:$0xff]  ;;  %v3316_v40 = vld [vmem:[%s4595_s6 + $0x18] sm:$0xff]   ;;  %v767_v42 = vld [vmem:[%s4590_s1 + $0xa8] sm:$0xff] }
  0x1d   :  { %v3311_v41 = vld [vmem:[%s4591_s2 + $0x38] sm:$0xff]   ;;  %v766_v43 = vld [vmem:[%s4590_s1 + $0xa0] sm:$0xff]  ;;  %v3317_v44 = vld [vmem:[%s4595_s6 + $0x10] sm:$0xff]  }
  0x1e   :  { %2908 = vmatpush3.bf16.msra.mxu0 %v3299_v4  ;;  %2936 = vmatpush3.bf16.msra.mxu1 %v3313_v29  ;;  %v769_v45 = vld [vmem:[%s4590_s1 + $0xb8] sm:$0xff]  ;;  %v768_v46 = vld [vmem:[%s4590_s1 + $0xb0] sm:$0xff]  ;;  %v3318_v47 = vld [vmem:[%s4595_s6 + $0x8] sm:$0xff]  }
  0x1f   :  { %2909 = vmatprep.subr.bf16.mxu0 %v3300_v6  ;;  %978 = vperm.xlu1 %3295, %v753_v16   ;;  %v771_v48 = vld [vmem:[%s4590_s1 + $0xc8] sm:$0xff]  ;;  %v770_v49 = vld [vmem:[%s4590_s1 + $0xc0] sm:$0xff]  ;;  %v773_v51 = vld [vmem:[%s4590_s1 + $0xd8] sm:$0xff] }
  0x20   :  { %975 = vperm.xlu0 %3294, %v752_v17   ;;  %2937 = vmatprep.subr.bf16.mxu1 %v3314_v32  ;;  %v3319_v50 = vld [vmem:[%s4595_s6] sm:$0xff]   ;;  %v772_v52 = vld [vmem:[%s4590_s1 + $0xd0] sm:$0xff]  ;;  %v775_v53 = vld [vmem:[%s4590_s1 + $0xe8] sm:$0xff] }
  0x21   :  { %v774_v54 = vld [vmem:[%s4590_s1 + $0xe0] sm:$0xff]  ;;  %v777_v55 = vld [vmem:[%s4590_s1 + $0xf8] sm:$0xff]  ;;  %v776_v56 = vld [vmem:[%s4590_s1 + $0xf0] sm:$0xff] }
  0x22   :  { %2910 = vmatpush3.bf16.msra.mxu0 %v3300_v6  ;;  %2938 = vmatpush3.bf16.msra.mxu1 %v3314_v32  ;;  %v715_v57 = vld [vmem:[%s4589_s0 + $0x8] sm:$0xff]  ;;  %v714_v58 = vld [vmem:[%s4589_s0] sm:$0xff]  ;;  %v717_v59 = vld [vmem:[%s4589_s0 + $0x18] sm:$0xff] }
  0x23   :  { %2911 = vmatprep.subr.bf16.mxu0 %v3301_v7  ;;  %984 = vperm.xlu1 %3295, %v755_v19   ;;  %v716_v60 = vld [vmem:[%s4589_s0 + $0x10] sm:$0xff]  ;;  %v719_v61 = vld [vmem:[%s4589_s0 + $0x28] sm:$0xff]  ;;  %v718_v62 = vld [vmem:[%s4589_s0 + $0x20] sm:$0xff] }
  0x24   :  { %981 = vperm.xlu0 %3294, %v754_v20   ;;  %2939 = vmatprep.subr.bf16.mxu1 %v3315_v37  ;;  %v721_v63 = vld [vmem:[%s4589_s0 + $0x38] sm:$0xff]  ;;  %v720_v0 = vld [vmem:[%s4589_s0 + $0x30] sm:$0xff]  ;;  %v3320_v1 = vld [vmem:[%s4592_s3] sm:$0xff]  }
  0x25   :  { %v3321_v2 = vld [vmem:[%s4592_s3 + $0x8] sm:$0xff]   ;;  %2949 = vmatprep.mubr.bf16.mxu1 %v3320_v1  ;;  %v722_v4 = vld [vmem:[%s4589_s0 + $0x40] sm:$0xff]  ;;  %v725_v5 = vld [vmem:[%s4589_s0 + $0x58] sm:$0xff] }
  0x26   :  { %2912 = vmatpush3.bf16.msra.mxu0 %v3301_v7  ;;  %2940 = vmatpush3.bf16.msra.mxu1 %v3315_v37  ;;  %v723_v3 = vld [vmem:[%s4589_s0 + $0x48] sm:$0xff]  ;;  %v724_v6 = vld [vmem:[%s4589_s0 + $0x50] sm:$0xff]  ;;  %v3323_v8 = vld [vmem:[%s4592_s3 + $0x18] sm:$0xff]  }
  0x27   :  { %2913 = vmatprep.subr.bf16.mxu0 %v3302_v12  ;;  %990 = vperm.xlu1 %3295, %v757_v22   ;;  %v3322_v7 = vld [vmem:[%s4592_s3 + $0x10] sm:$0xff]   ;;  %v727_v9 = vld [vmem:[%s4589_s0 + $0x68] sm:$0xff]  ;;  %v726_v10 = vld [vmem:[%s4589_s0 + $0x60] sm:$0xff] }
  0x28   :  { %987 = vperm.xlu0 %3294, %v756_v23   ;;  %2941 = vmatprep.subr.bf16.mxu1 %v3316_v40  ;;  %v729_v11 = vld [vmem:[%s4589_s0 + $0x78] sm:$0xff]  ;;  %v3324_v13 = vld [vmem:[%s4592_s3 + $0x20] sm:$0xff]   ;;  %v3325_v14 = vld [vmem:[%s4592_s3 + $0x28] sm:$0xff]  }
  0x29   :  { %v730_v16 = vld [vmem:[%s4589_s0 + $0x80] sm:$0xff]  ;;  %v733_v17 = vld [vmem:[%s4589_s0 + $0x98] sm:$0xff]  ;;  %v3326_v19 = vld [vmem:[%s4592_s3 + $0x30] sm:$0xff]  }
  0x2a   :  { %2914 = vmatpush3.bf16.msra.mxu0 %v3302_v12  ;;  %2942 = vmatpush3.bf16.msra.mxu1 %v3316_v40  ;;  %v728_v12 = vld [vmem:[%s4589_s0 + $0x70] sm:$0xff]  ;;  %v3327_v20 = vld [vmem:[%s4592_s3 + $0x38] sm:$0xff]   ;;  %v734_v22 = vld [vmem:[%s4589_s0 + $0xa0] sm:$0xff] }
  0x2b   :  { %2915 = vmatprep.subr.bf16.mxu0 %v3303_v15  ;;  %996 = vperm.xlu1 %3295, %v759_v25   ;;  %v737_v23 = vld [vmem:[%s4589_s0 + $0xb8] sm:$0xff]  ;;  %v3328_v25 = vld [vmem:[%s4592_s3 + $0x40] sm:$0xff]   ;;  %v744_v37 = vld [vmem:[%s4589_s0 + $0xf0] sm:$0xff] }
  0x2c   :  { %993 = vperm.xlu0 %3294, %v758_v27   ;;  %2943 = vmatprep.subr.bf16.mxu1 %v3317_v44  ;;  %v739_v27 = vld [vmem:[%s4589_s0 + $0xc8] sm:$0xff]  ;;  %v738_v28 = vld [vmem:[%s4589_s0 + $0xc0] sm:$0xff]  ;;  %v741_v29 = vld [vmem:[%s4589_s0 + $0xd8] sm:$0xff] }
  0x2d   :  { %v3331_v32 = vld [vmem:[%s4592_s3 + $0x58] sm:$0xff]   ;;  %v3333_v40 = vld [vmem:[%s4592_s3 + $0x68] sm:$0xff]  }
  0x2e   :  { %2916 = vmatpush3.bf16.msra.mxu0 %v3303_v15  ;;  %2944 = vmatpush3.bf16.msra.mxu1 %v3317_v44  ;;  %v731_v15 = vld [vmem:[%s4589_s0 + $0x88] sm:$0xff] }
  0x2f   :  { %1002 = vperm.xlu1 %3295, %v761_v30   ;;  %2945 = vmatprep.subr.bf16.mxu1 %v3318_v47  ;;  %v740_v30 = vld [vmem:[%s4589_s0 + $0xd0] sm:$0xff] }
  0x30   :  { %999 = vperm.xlu0 %3294, %v760_v31   ;;  %v3330_v31 = vld [vmem:[%s4592_s3 + $0x50] sm:$0xff]  }
  0x31   :  { %2918 = vmatmul.mubr.bf16.vlgmr.msra.gmra.mxu0 %v3305_v18  ;;  %v732_v18 = vld [vmem:[%s4589_s0 + $0x90] sm:$0xff] }
  0x32   :  { %2921 = vmatprep.mubr.bf16.mxu0 %v3306_v21  ;;  %2946 = vmatpush3.bf16.msra.mxu1 %v3318_v47  ;;  %v735_v21 = vld [vmem:[%s4589_s0 + $0xa8] sm:$0xff]  ;;  %v3335_v47 = vld [vmem:[%s4592_s3 + $0x78] sm:$0xff]  }
  0x33   :  { %1008 = vperm.xlu1 %3295, %v763_v34   ;;  %2947 = vmatprep.subr.bf16.mxu1 %v3319_v50  ;;  %v742_v34 = vld [vmem:[%s4589_s0 + $0xe0] sm:$0xff] }
  0x34   :  { %1005 = vperm.xlu0 %3294, %v762_v35   ;;  %v778_v35 = vlaneseq }
  0x36   :  { %2948 = vmatpush3.bf16.msra.mxu1 %v3319_v50  ;;  %v3341_v50 = vld [vmem:[%s4597_s8 + $0x28] sm:$0xff]  }
  0x37   :  { %1014 = vperm.xlu1 %3295, %v765_v38   ;;  %v3332_v38 = vld [vmem:[%s4592_s3 + $0x60] sm:$0xff]  }
  0x38   :  { %1011 = vperm.xlu0 %3294, %v764_v39   ;;  %v3829_v39 = vand.u32 127, %v778_v35 }
  0x39   :  { %2922 = vmatmul.mubr.bf16.gmra.mxu0 %v3307_v24  ;;  %2950 = vmatmul.mubr.bf16.vlgmr.msra.gmra.mxu1 %v3321_v2  ;;  %v736_v24 = vld [vmem:[%s4589_s0 + $0xb0] sm:$0xff] }
  0x3a   :  { %2925 = vmatprep.mubr.bf16.mxu0 %v3308_v26  ;;  %2953 = vmatprep.mubr.bf16.mxu1 %v3322_v7  ;;  %v3329_v26 = vld [vmem:[%s4592_s3 + $0x48] sm:$0xff]  }
  0x3b   :  { %1020 = vperm.xlu1 %3295, %v767_v42  }
  0x3c   :  { %1017 = vperm.xlu0 %3294, %v766_v43  }
  0x3f   :  { %1026 = vperm.xlu1 %3295, %v769_v45  }
  0x40   :  { %1023 = vperm.xlu0 %3294, %v768_v46   ;;  %v3334_v46 = vld [vmem:[%s4592_s3 + $0x70] sm:$0xff]  }
  0x41   :  { %2926 = vmatmul.mubr.bf16.gmra.mxu0 %v3309_v33  ;;  %2954 = vmatmul.mubr.bf16.gmra.mxu1 %v3323_v8  ;;  %v743_v33 = vld [vmem:[%s4589_s0 + $0xe8] sm:$0xff]  ;;  %v4621_v8 = vmov 0 }
  0x42   :  { %2929 = vmatprep.mubr.bf16.mxu0 %v3310_v36  ;;  %2957 = vmatprep.mubr.bf16.mxu1 %v3324_v13  ;;  %v745_v36 = vld [vmem:[%s4589_s0 + $0xf8] sm:$0xff] }
  0x43   :  { %1032 = vperm.xlu1 %3295, %v771_v48  }
  0x44   :  { %1029 = vperm.xlu0 %3294, %v770_v49  }
  0x47   :  { %1038 = vperm.xlu1 %3295, %v773_v51  }
  0x48   :  { %1035 = vperm.xlu0 %3294, %v772_v52  }
  0x49   :  { %2930 = vmatmul.mubr.bf16.gmra.mxu0 %v3311_v41  ;;  %2958 = vmatmul.mubr.bf16.gmra.mxu1 %v3325_v14  ;;  %v4625_v14 = vmov 0 }
  0x4a   :  { %2961 = vmatprep.mubr.bf16.mxu1 %v3326_v19 }
  0x4b   :  { %1044 = vperm.xlu1 %3295, %v775_v53  }
  0x4c   :  { %1041 = vperm.xlu0 %3294, %v774_v54  }
  0x4f   :  { %1050 = vperm.xlu1 %3295, %v777_v55  }
  0x50   :  { %1047 = vperm.xlu0 %3294, %v776_v56   ;;  %v3438_v56 = vmov 1.0|1.0  }
  0x51   :  { %2962 = vmatmul.mubr.bf16.gmra.mxu1 %v3327_v20  ;;  %v4629_v20 = vmov 0 }
  0x52   :  { %2965 = vmatprep.mubr.bf16.mxu1 %v3328_v25 }
  0x53   :  { %784 = vperm.xlu1 %3295, %v715_v57   ;;  %v3345_v57 = vld [vmem:[%s4597_s8 + $0x18] sm:$0xff]  }
  0x54   :  { %781 = vperm.xlu0 %3294, %v714_v58  }
  0x57   :  { %790 = vperm.xlu1 %3295, %v717_v59  }
  0x58   :  { %787 = vperm.xlu0 %3294, %v716_v60  }
  0x59   :  { %2966 = vmatmul.mubr.bf16.gmra.mxu1 %v3329_v26 }
  0x5a   :  { %2969 = vmatprep.mubr.bf16.mxu1 %v3330_v31 }
  0x5b   :  { %796 = vperm.xlu1 %3295, %v719_v61  }
  0x5c   :  { %793 = vperm.xlu0 %3294, %v718_v62  }
  0x5f   :  { %802 = vperm.xlu1 %3295, %v721_v63  }
  0x60   :  { %799 = vperm.xlu0 %3294, %v720_v0  }
  0x61   :  { %2970 = vmatmul.mubr.bf16.gmra.mxu1 %v3331_v32 }
  0x62   :  { %2973 = vmatprep.mubr.bf16.mxu1 %v3332_v38 }
  0x63   :  { %808 = vperm.xlu1 %3295, %v723_v3  }
  0x64   :  { %805 = vperm.xlu0 %3294, %v722_v4  }
  0x67   :  { %814 = vperm.xlu1 %3295, %v725_v5  }
  0x68   :  { %811 = vperm.xlu0 %3294, %v724_v6  }
  0x69   :  { %2974 = vmatmul.mubr.bf16.gmra.mxu1 %v3333_v40 }
  0x6a   :  { %2977 = vmatprep.mubr.bf16.mxu1 %v3334_v46 }
  0x6b   :  { %820 = vperm.xlu1 %3295, %v727_v9  }
  0x6c   :  { %817 = vperm.xlu0 %3294, %v726_v10  }
  0x6f   :  { %826 = vperm.xlu1 %3295, %v729_v11   ;;  %v4623_v11 = vmov 0 }
  0x70   :  { %823 = vperm.xlu0 %3294, %v728_v12  }
  0x71   :  { %2978 = vmatmul.mubr.bf16.gmra.mxu1 %v3335_v47 }
  0x73   :  { %832 = vperm.xlu1 %3295, %v731_v15  }
  0x74   :  { %829 = vperm.xlu0 %3294, %v730_v16  }
  0x77   :  { %838 = vperm.xlu1 %3295, %v733_v17   ;;  %v4627_v17 = vmov 0 }
  0x78   :  { %835 = vperm.xlu0 %3294, %v732_v18  }
  0x7b   :  { %844 = vperm.xlu1 %3295, %v735_v21  }
  0x7c   :  { %841 = vperm.xlu0 %3294, %v734_v22  }
  0x7f   :  { %850 = vperm.xlu1 %3295, %v737_v23  }
  0x80   :  { %847 = vperm.xlu0 %3294, %v736_v24  }
  0x83   :  { %856 = vperm.xlu1 %3295, %v739_v27  }
  0x84   :  { %853 = vperm.xlu0 %3294, %v738_v28  }
  0x87   :  { %862 = vperm.xlu1 %3295, %v741_v29  }
  0x88   :  { %859 = vperm.xlu0 %3294, %v740_v30  }
  0x8b   :  { %868 = vperm.xlu1 %3295, %v743_v33  }
  0x8c   :  { %865 = vperm.xlu0 %3294, %v742_v34  }
  0x8e   :  { %v964_v41 = vpop.permute.xlu1 %963 }
  0x8f   :  { %v958_v42 = vpop.permute.xlu0 %957  ;;  %874 = vperm.xlu1 %3295, %v745_v36   ;;  %vm1054_vm0 = vcmp.eq.s32.totalorder %v3829_v39, %v964_v41 }
  0x90   :  { %871 = vperm.xlu0 %3294, %v744_v37   ;;  %vm1052_vm5 = vcmp.eq.s32.totalorder %v3829_v39, %v958_v42 }
  0x92   :  { %v967_v43 = vpop.permute.xlu1 %966 }
  0x93   :  { %v961_v44 = vpop.permute.xlu0 %960  ;;  %vm1055_vm1 = vcmp.eq.s32.totalorder %v3829_v39, %v967_v43 }
  0x94   :  { %vm3836_vm2 = vmpackc.low %vm1055_vm1, %vm1054_vm0  ;;  %vm1053_vm6 = vcmp.eq.s32.totalorder %v3829_v39, %v961_v44  ;;  %v2577_v44 = vld [vmem:[%s4594_s5] ss:$0 sm:$0xff] }
  0x95   :  { %vm2651_vm8 = vmpackc.low %vm1053_vm6, %vm1052_vm5 }
  0x96   :  { %v973_v48 = vpop.permute.xlu1 %972  ;;  %3045 = vmatprep.mubr.msk.bf16.mxu1 %vm2651_vm8, %v3438_v56 }
  0x97   :  { %v970_v49 = vpop.permute.xlu0 %969  ;;  %vm1057_vm3 = vcmp.eq.s32.totalorder %v3829_v39, %v973_v48 }
  0x98   :  { %vm1056_vm4 = vcmp.eq.s32.totalorder %v3829_v39, %v970_v49 }
  0x99   :  { %vm3850_vm7 = vmpackc.low %vm1057_vm3, %vm1056_vm4 }
  0x9a   :  { %v979_v51 = vpop.permute.xlu1 %978 }
  0x9b   :  { %v976_v52 = vpop.permute.xlu0 %975  ;;  %vm1059_vm9 = vcmp.eq.s32.totalorder %v3829_v39, %v979_v51 }
  0x9c   :  { %vm1058_vm10 = vcmp.eq.s32.totalorder %v3829_v39, %v976_v52 }
  0x9d   :  { %vm3856_vm11 = vmpackc.low %vm1059_vm9, %vm1058_vm10 }
  0x9e   :  { %v985_v54 = vpop.permute.xlu1 %984 }
  0x9f   :  { %v982_v55 = vpop.permute.xlu0 %981  ;;  %vm1061_vm12 = vcmp.eq.s32.totalorder %v3829_v39, %v985_v54 }
  0xa0   :  { %vm1060_vm13 = vcmp.eq.s32.totalorder %v3829_v39, %v982_v55 }
  0xa1   :  { %vm3863_vm14 = vmpackc.low %vm1061_vm12, %vm1060_vm13 }
  0xa2   :  { %v991_v58 = vpop.permute.xlu1 %990 }
  0xa3   :  { %v988_v59 = vpop.permute.xlu0 %987  ;;  %vm1063_vm15 = vcmp.eq.s32.totalorder %v3829_v39, %v991_v58 }
  0xa4   :  { %vm1062_vm0 = vcmp.eq.s32.totalorder %v3829_v39, %v988_v59 }
  0xa5   :  { %vm3869_vm1 = vmpackc.low %vm1063_vm15, %vm1062_vm0 }
  0xa6   :  { %v997_v61 = vpop.permute.xlu1 %996 }
  0xa7   :  { %v994_v62 = vpop.permute.xlu0 %993  ;;  %vm1065_vm3 = vcmp.eq.s32.totalorder %v3829_v39, %v997_v61 }
  0xa8   :  { %vm1064_vm4 = vcmp.eq.s32.totalorder %v3829_v39, %v994_v62 }
  0xa9   :  { %vm3875_vm5 = vmpackc.low %vm1065_vm3, %vm1064_vm4 }
  0xaa   :  { %v1003_v0 = vpop.permute.xlu1 %1002 }
  0xab   :  { %v1000_v1 = vpop.permute.xlu0 %999  ;;  %vm1067_vm6 = vcmp.eq.s32.totalorder %v3829_v39, %v1003_v0 }
  0xac   :  { %vm1066_vm8 = vcmp.eq.s32.totalorder %v3829_v39, %v1000_v1 }
  0xad   :  { %vm3881_vm9 = vmpackc.low %vm1067_vm6, %vm1066_vm8 }
  0xae   :  { %v1009_v3 = vpop.permute.xlu1 %1008 }
  0xaf   :  { %v1006_v4 = vpop.permute.xlu0 %1005  ;;  %vm1069_vm10 = vcmp.eq.s32.totalorder %v3829_v39, %v1009_v3 }
  0xb0   :  { %vm1068_vm12 = vcmp.eq.s32.totalorder %v3829_v39, %v1006_v4 }
  0xb1   :  { %vm3887_vm13 = vmpackc.low %vm1069_vm10, %vm1068_vm12 }
  0xb2   :  { %v1015_v6 = vpop.permute.xlu1 %1014 }
  0xb3   :  { %v1012_v7 = vpop.permute.xlu0 %1011  ;;  %vm1071_vm15 = vcmp.eq.s32.totalorder %v3829_v39, %v1015_v6 }
  0xb4   :  { %vm1070_vm0 = vcmp.eq.s32.totalorder %v3829_v39, %v1012_v7 }
  0xb5   :  { %vm3893_vm3 = vmpackc.low %vm1071_vm15, %vm1070_vm0 }
  0xb6   :  { %v4622_v8 = vsel %vm3893_vm3, 4294967295, %v4621_v8  ;;  %v1021_v9 = vpop.permute.xlu1 %1020 }
  0xb7   :  { %v1018_v10 = vpop.permute.xlu0 %1017  ;;  %vm1073_vm4 = vcmp.eq.s32.totalorder %v3829_v39, %v1021_v9 }
  0xb8   :  { %vm1072_vm6 = vcmp.eq.s32.totalorder %v3829_v39, %v1018_v10 }
  0xb9   :  { %vm3899_vm8 = vmpackc.low %vm1073_vm4, %vm1072_vm6 }
  0xba   :  { %v4624_v11 = vsel %vm3899_vm8, 4294967295, %v4623_v11  ;;  %v1027_v12 = vpop.permute.xlu1 %1026 }
  0xbb   :  { %v1024_v13 = vpop.permute.xlu0 %1023  ;;  %vm1075_vm10 = vcmp.eq.s32.totalorder %v3829_v39, %v1027_v12 }
  0xbc   :  { %vm1074_vm12 = vcmp.eq.s32.totalorder %v3829_v39, %v1024_v13 }
  0xbd   :  { %vm3905_vm15 = vmpackc.low %vm1075_vm10, %vm1074_vm12 }
  0xbe   :  { %v4626_v14 = vsel %vm3905_vm15, 4294967295, %v4625_v14  ;;  %v1033_v15 = vpop.permute.xlu1 %1032 }
  0xbf   :  { %v1030_v16 = vpop.permute.xlu0 %1029  ;;  %vm1077_vm0 = vcmp.eq.s32.totalorder %v3829_v39, %v1033_v15 }
  0xc0   :  { %vm1076_vm3 = vcmp.eq.s32.totalorder %v3829_v39, %v1030_v16 }
  0xc1   :  { %vm3911_vm4 = vmpackc.low %vm1077_vm0, %vm1076_vm3 }
  0xc2   :  { %v4628_v17 = vsel %vm3911_vm4, 4294967295, %v4627_v17  ;;  %v1039_v18 = vpop.permute.xlu1 %1038 }
  0xc3   :  { %v1036_v19 = vpop.permute.xlu0 %1035  ;;  %vm1079_vm6 = vcmp.eq.s32.totalorder %v3829_v39, %v1039_v18 }
  0xc4   :  { %vm1078_vm8 = vcmp.eq.s32.totalorder %v3829_v39, %v1036_v19 }
  0xc5   :  { %vm3917_vm10 = vmpackc.low %vm1079_vm6, %vm1078_vm8 }
  0xc6   :  { %v4630_v20 = vsel %vm3917_vm10, 4294967295, %v4629_v20  ;;  %v1045_v21 = vpop.permute.xlu1 %1044 }
  0xc7   :  { %v1042_v22 = vpop.permute.xlu0 %1041  ;;  %vm1081_vm12 = vcmp.eq.s32.totalorder %v3829_v39, %v1045_v21 }
  0xc8   :  { %vm1080_vm15 = vcmp.eq.s32.totalorder %v3829_v39, %v1042_v22 }
  0xc9   :  { %vm3923_vm3 = vmpackc.low %vm1081_vm12, %vm1080_vm15 }
  0xca   :  { %v1051_v24 = vpop.permute.xlu1 %1050 }
  0xcb   :  { %v1048_v25 = vpop.permute.xlu0 %1047  ;;  %vm1083_vm0 = vcmp.eq.s32.totalorder %v3829_v39, %v1051_v24 }
  0xcc   :  { %vm1082_vm4 = vcmp.eq.s32.totalorder %v3829_v39, %v1048_v25 }
  0xcd   :  { %vm3929_vm8 = vmpackc.low %vm1083_vm0, %vm1082_vm4 }
  0xce   :  { %v785_v27 = vpop.permute.xlu1 %784 }
  0xcf   :  { %v782_v28 = vpop.permute.xlu0 %781  ;;  %vm877_vm6 = vcmp.eq.s32.totalorder %v3829_v39, %v785_v27 }
  0xd0   :  { %vm876_vm10 = vcmp.eq.s32.totalorder %v3829_v39, %v782_v28 }
  0xd1   :  { %vm2619_vm15 = vmpackc.low %vm877_vm6, %vm876_vm10 }
  0xd2   :  { %2997 = vmatprep.mubr.msk.bf16.mxu0 %vm2619_vm15, %v3438_v56  ;;  %v3945_v49 = vpop.permute.xlu1 %790 }
  0xd3   :  { %v3947_v52 = vpop.permute.xlu0 %787  ;;  %vm879_vm4 = vcmp.eq.s32.totalorder %v3829_v39, %v3945_v49 }
  0xd4   :  { %vm878_vm10 = vcmp.eq.s32.totalorder %v3829_v39, %v3947_v52 }
  0xd5   :  { %vm2621_vm6 = vmpackc.low %vm879_vm4, %vm878_vm10 }
  0xd6   :  { %v3949_v0 = vpop.permute.xlu1 %796 }
  0xd7   :  { %v3951_v1 = vpop.permute.xlu0 %793  ;;  %vm881_vm12 = vcmp.eq.s32.totalorder %v3829_v39, %v3949_v0 }
  0xd8   :  { %vm880_vm0 = vcmp.eq.s32.totalorder %v3829_v39, %v3951_v1 }
  0xd9   :  { %vm2623_vm15 = vmpackc.low %vm881_vm12, %vm880_vm0 }
  0xda   :  { %v3953_v10 = vpop.permute.xlu1 %802 }
  0xdb   :  { %v3955_v12 = vpop.permute.xlu0 %799 }
  0xde   :  { %v3957_v19 = vpop.permute.xlu1 %808 }
  0xdf   :  { %v3959_v21 = vpop.permute.xlu0 %805  ;;  %vm885_vm4 = vcmp.eq.s32.totalorder %v3829_v39, %v3957_v19 }
  0xe0   :  { %vm884_vm10 = vcmp.eq.s32.totalorder %v3829_v39, %v3959_v21 }
  0xe1   :  { %vm2627_vm0 = vmpackc.low %vm885_vm4, %vm884_vm10 }
  0xf1   :  { %v3936_v29 = vpop.f32.mrf.mxu0 }
  0xf2   :  { %v244_v25 = vadd.f32 %v3936_v29, %v2577_v44  ;;  %v3971_v29 = vld [vmem:[%s4596_s7] ss:$0 sm:$0xff] }
  0xf3   :  { %v3938_v30 = vpop.f32.mrf.mxu0 }
  0xf5   :  { %v2920_v31 = vpop.f32.mrf.mxu0 }
  0xf6   :  { %v247_v22 = vadd.f32 %v2920_v31, %v2577_v44 }
  0xf7   :  { %v3940_v32 = vpop.f32.mrf.mxu0 }
  0xf8   :  { %v299_v27 = vpack.c.bf16 %v247_v22, %v244_v25  ;;  %v239_v28 = vadd.f32 %v2577_v44, %v3940_v32  ;;  %v3336_v32 = vld [vmem:[%s4598_s9 + $0x38] sm:$0xff]   ;;  %v3346_v25 = vld [vmem:[%s4598_s9 + $0x10] sm:$0xff]  }
  0xf9   :  { %v2923_v33 = vpop.f32.mrf.mxu0 }
  0xfa   :  { %v260_v13 = vadd.f32 %v2923_v33, %v2577_v44  ;;  %v3963_v33 = vpop.permute.xlu1 %814 }
  0xfb   :  { %v251_v34 = vpop.f32.mrf.mxu0 }
  0xfc   :  { %v252_v18 = vadd.f32 %v2577_v44, %v251_v34  ;;  %v3965_v34 = vpop.permute.xlu0 %811 }
  0xfd   :  { %v2924_v35 = vpop.f32.mrf.mxu0 }
  0xfe   :  { %v263_v7 = vadd.f32 %v2924_v35, %v2577_v44  ;;  %v236_v35 = vadd.f32 %v2577_v44, %v3938_v30  ;;  %v3337_v30 = vld [vmem:[%s4597_s8 + $0x38] sm:$0xff]  }
  0xff   :  { %v254_v36 = vpop.f32.mrf.mxu0 }
 0x100   :  { %v301_v15 = vpack.c.bf16 %v263_v7, %v260_v13  ;;  %v255_v16 = vadd.f32 %v2577_v44, %v254_v36  ;;  %v298_v31 = vpack.c.bf16 %v239_v28, %v236_v35  ;;  %v3973_v36 = vpop.permute.xlu1 %820  ;;  %v3344_v13 = vld [vmem:[%s4598_s9 + $0x18] sm:$0xff]  }
 0x101   :  { %v2927_v37 = vpop.f32.mrf.mxu0 }
 0x102   :  { %v276_v62 = vadd.f32 %v2927_v37, %v2577_v44  ;;  %v300_v24 = vpack.c.bf16 %v255_v16, %v252_v18  ;;  %v3981_v37 = vpop.permute.xlu0 %817 }
 0x103   :  { %v267_v38 = vpop.f32.mrf.mxu0 }
 0x104   :  { %v268_v6 = vadd.f32 %v2577_v44, %v267_v38  ;;  %v2951_v38 = vpop.f32.mrf.mxu1 }
 0x105   :  { %v2928_v40 = vpop.f32.mrf.mxu0 }
 0x106   :  { %v279_v59 = vadd.f32 %v2928_v40, %v2577_v44  ;;  %v3988_v40 = vadd.f32 %v2951_v38, %v3971_v29  ;;  %v4014_v49 = vpop.permute.xlu0 %823 }
 0x107   :  { %v270_v41 = vpop.f32.mrf.mxu0 }
 0x108   :  { %v303_v3 = vpack.c.bf16 %v279_v59, %v276_v62  ;;  %v271_v4 = vadd.f32 %v2577_v44, %v270_v41  ;;  %v539_v41 = vpop.f32.mrf.mxu1  ;;  %668 = vst [vmem:[#allocation6 + $0x10] sm:$0xff] %v3988_v40 }
 0x109   :  { %v2931_v42 = vpop.f32.mrf.mxu0 }
 0x10a   :  { %v292_v47 = vadd.f32 %v2931_v42, %v2577_v44  ;;  %v302_v9 = vpack.c.bf16 %v271_v4, %v268_v6  ;;  %v3996_v42 = vadd.f32 %v3971_v29, %v539_v41  ;;  %v4052_v1 = vpop.permute.xlu0 %829  ;;  %v3342_v4 = vld [vmem:[%s4598_s9 + $0x20] sm:$0xff]  }
 0x10b   :  { %v283_v43 = vpop.f32.mrf.mxu0  ;;  %v3343_v6 = vld [vmem:[%s4597_s8 + $0x20] sm:$0xff]   ;;  %vm892_vm10 = vcmp.eq.s32.totalorder %v3829_v39, %v4052_v1 }
 0x10c   :  { %v284_v54 = vadd.f32 %v2577_v44, %v283_v43  ;;  %v2952_v43 = vpop.f32.mrf.mxu1  ;;  %666 = vst [vmem:[#allocation6] sm:$0xff] %v3996_v42 }
 0x10d   :  { %v2932_v46 = vpop.f32.mrf.mxu0 }
 0x10e   :  { %v295_v48 = vadd.f32 %v2932_v46, %v2577_v44  ;;  %v3339_v46 = vld [vmem:[%s4597_s8 + $0x30] sm:$0xff]   ;;  %v4103_v19 = vpop.permute.xlu0 %835 }
 0x10f   :  { %v286_v51 = vpop.f32.mrf.mxu0 }
 0x110   :  { %v305_v55 = vpack.c.bf16 %v295_v48, %v292_v47  ;;  %v287_v58 = vadd.f32 %v2577_v44, %v286_v51  ;;  %v3338_v44 = vld [vmem:[%s4598_s9 + $0x30] sm:$0xff]   ;;  %v4004_v47 = vpop.permute.xlu1 %826  ;;  %v4012_v48 = vadd.f32 %v2952_v43, %v3971_v29  ;;  %v542_v51 = vpop.f32.mrf.mxu1 }
 0x111   :  { %v4024_v52 = vadd.f32 %v3971_v29, %v542_v51 }
 0x112   :  { %v304_v61 = vpack.c.bf16 %v287_v58, %v284_v54  ;;  %2981 = vmatprep.subr.bf16.mxu0 %v305_v55  ;;  %3029 = vmatprep.subr.bf16.mxu1 %v305_v55  ;;  %669 = vst [vmem:[#allocation6 + $0x18] sm:$0xff] %v4012_v48  ;;  %v699_v45 = vpack.c.bf16 %v4012_v48, %v3988_v40  ;;  %v2955_v54 = vpop.f32.mrf.mxu1 }
 0x113   :  { %2982 = vmatpush3.bf16.msra.mxu0 %v305_v55  ;;  %3030 = vmatpush3.bf16.msra.mxu1 %v305_v55  ;;  %v3340_v55 = vld [vmem:[%s4598_s9 + $0x28] sm:$0xff]   ;;  %667 = vst [vmem:[#allocation6 + $0x8] sm:$0xff] %v4024_v52  ;;  %v698_v58 = vpack.c.bf16 %v4024_v52, %v3996_v42  ;;  %v4040_v59 = vadd.f32 %v2955_v54, %v3971_v29 }
 0x114   :  { %2983 = vmatprep.subr.bf16.mxu0 %v304_v61  ;;  %3031 = vmatprep.subr.bf16.mxu1 %v304_v61  ;;  %v4046_v62 = vpop.permute.xlu1 %832 }
 0x115   :  { %672 = vst [vmem:[#allocation6 + $0x30] sm:$0xff] %v4040_v59  ;;  %vm893_vm4 = vcmp.eq.s32.totalorder %v3829_v39, %v4046_v62 }
 0x117   :  { %2984 = vmatpush3.bf16.msra.mxu0 %v304_v61  ;;  %3032 = vmatpush3.bf16.msra.mxu1 %v304_v61  ;;  %v555_v61 = vpop.f32.mrf.mxu1 }
 0x118   :  { %2985 = vmatprep.subr.bf16.mxu0 %v303_v3  ;;  %3033 = vmatprep.subr.bf16.mxu1 %v303_v3  ;;  %v4050_v0 = vadd.f32 %v3971_v29, %v555_v61 }
 0x11a   :  { %670 = vst [vmem:[#allocation6 + $0x20] sm:$0xff] %v4050_v0 }
 0x11b   :  { %2986 = vmatpush3.bf16.msra.mxu0 %v303_v3  ;;  %3034 = vmatpush3.bf16.msra.mxu1 %v303_v3  ;;  %v2956_v3 = vpop.f32.mrf.mxu1 }
 0x11c   :  { %2987 = vmatprep.subr.bf16.mxu0 %v302_v9  ;;  %3035 = vmatprep.subr.bf16.mxu1 %v302_v9  ;;  %v4069_v7 = vadd.f32 %v2956_v3, %v3971_v29 }
 0x11e   :  { %673 = vst [vmem:[#allocation6 + $0x38] sm:$0xff] %v4069_v7 }
 0x11f   :  { %2988 = vmatpush3.bf16.msra.mxu0 %v302_v9  ;;  %3036 = vmatpush3.bf16.msra.mxu1 %v302_v9  ;;  %v558_v9 = vpop.f32.mrf.mxu1 }
 0x120   :  { %2989 = vmatprep.subr.bf16.mxu0 %v301_v15  ;;  %3037 = vmatprep.subr.bf16.mxu1 %v301_v15  ;;  %v4079_v53 = vadd.f32 %v3971_v29, %v558_v9 }
 0x122   :  { %671 = vst [vmem:[#allocation6 + $0x28] sm:$0xff] %v4079_v53  ;;  %v700_v16 = vpack.c.bf16 %v4079_v53, %v4050_v0 }
 0x123   :  { %2990 = vmatpush3.bf16.msra.mxu0 %v301_v15  ;;  %3038 = vmatpush3.bf16.msra.mxu1 %v301_v15  ;;  %v4091_v15 = vpop.permute.xlu1 %838 }
 0x124   :  { %2991 = vmatprep.subr.bf16.mxu0 %v300_v24  ;;  %3039 = vmatprep.subr.bf16.mxu1 %v300_v24 }
 0x127   :  { %2992 = vmatpush3.bf16.msra.mxu0 %v300_v24  ;;  %3040 = vmatpush3.bf16.msra.mxu1 %v300_v24 }
 0x128   :  { %2993 = vmatprep.subr.bf16.mxu0 %v299_v27  ;;  %3041 = vmatprep.subr.bf16.mxu1 %v299_v27 }
 0x12b   :  { %2994 = vmatpush3.bf16.msra.mxu0 %v299_v27  ;;  %3042 = vmatpush3.bf16.msra.mxu1 %v299_v27  ;;  %v3347_v27 = vld [vmem:[%s4597_s8 + $0x10] sm:$0xff]  }
 0x12c   :  { %2995 = vmatprep.subr.bf16.mxu0 %v298_v31  ;;  %3043 = vmatprep.subr.bf16.mxu1 %v298_v31 }
 0x12f   :  { %2996 = vmatpush3.bf16.msra.mxu0 %v298_v31  ;;  %3044 = vmatpush3.bf16.msra.mxu1 %v298_v31  ;;  %v842_v31 = vpop.permute.xlu0 %841 }
 0x130   :  { %3077 = vmatprep.subr.bf16.mxu0 %v3336_v32  ;;  %3125 = vmatprep.subr.bf16.mxu1 %v3337_v30 }
 0x132   :  { %2998 = vmatmul.mubr.msk.bf16.vlgmr.msra.gmra.mxu0 %vm2621_vm6, %v3438_v56  ;;  %3046 = vmatmul.mubr.msk.bf16.vlgmr.msra.gmra.mxu1 %vm3836_vm2, %v3438_v56  ;;  %vm883_vm2 = vcmp.eq.s32.totalorder %v3829_v39, %v3953_v10  ;;  %v701_v10 = vpack.c.bf16 %v4069_v7, %v4040_v59  ;;  %vm889_vm6 = vcmp.eq.s32.totalorder %v3829_v39, %v3973_v36  ;;  %v3361_v7 = vld [vmem:[#allocation2 + $0x30] sm:$0xff]  }
 0x133   :  { %3001 = vmatprep.mubr.msk.bf16.mxu0 %vm2623_vm15, %v3438_v56  ;;  %3049 = vmatprep.mubr.msk.bf16.mxu1 %vm3850_vm7, %v3438_v56  ;;  %vm882_vm7 = vcmp.eq.s32.totalorder %v3829_v39, %v3955_v12  ;;  %v2959_v12 = vpop.f32.mrf.mxu1  ;;  %vm888_vm15 = vcmp.eq.s32.totalorder %v3829_v39, %v3981_v37 }
 0x134   :  { %3078 = vmatpush3.bf16.msra.mxu0 %v3336_v32  ;;  %3126 = vmatpush3.bf16.msra.mxu1 %v3337_v30  ;;  %vm2625_vm12 = vmpackc.low %vm883_vm2, %vm882_vm7  ;;  %v4097_v18 = vadd.f32 %v2959_v12, %v3971_v29 }
 0x135   :  { %3079 = vmatprep.subr.bf16.mxu0 %v3338_v44  ;;  %3127 = vmatprep.subr.bf16.mxu1 %v3339_v46  ;;  %v571_v21 = vpop.f32.mrf.mxu1  ;;  %vm2631_vm7 = vmpackc.low %vm889_vm6, %vm888_vm15 }
 0x136   :  { %676 = vst [vmem:[#allocation6 + $0x50] sm:$0xff] %v4097_v18  ;;  %v4107_v22 = vadd.f32 %v3971_v29, %v571_v21 }
 0x137   :  { %v2960_v24 = vpop.f32.mrf.mxu1 }
 0x138   :  { %3080 = vmatpush3.bf16.msra.mxu0 %v3338_v44  ;;  %3128 = vmatpush3.bf16.msra.mxu1 %v3339_v46  ;;  %674 = vst [vmem:[#allocation6 + $0x40] sm:$0xff] %v4107_v22  ;;  %v4121_v28 = vadd.f32 %v2960_v24, %v3971_v29  ;;  %v848_v44 = vpop.permute.xlu0 %847 }
 0x139   :  { %3081 = vmatprep.subr.bf16.mxu0 %v3340_v55  ;;  %3129 = vmatprep.subr.bf16.mxu1 %v3341_v50 }
 0x13a   :  { %3002 = vmatmul.mubr.msk.bf16.gmra.mxu0 %vm2625_vm12, %v3438_v56  ;;  %3050 = vmatmul.mubr.msk.bf16.gmra.mxu1 %vm3856_vm11, %v3438_v56  ;;  %vm887_vm11 = vcmp.eq.s32.totalorder %v3829_v39, %v3963_v33  ;;  %v574_v33 = vpop.f32.mrf.mxu1  ;;  %677 = vst [vmem:[#allocation6 + $0x58] sm:$0xff] %v4121_v28  ;;  %v703_v35 = vpack.c.bf16 %v4121_v28, %v4097_v18  ;;  %v3364_v18 = vld [vmem:[#allocation2 + $0x18] sm:$0xff]   ;;  %v3366_v28 = vld [vmem:[#allocation2 + $0x8] sm:$0xff]  }
 0x13b   :  { %3005 = vmatprep.mubr.msk.bf16.mxu0 %vm2627_vm0, %v3438_v56  ;;  %3053 = vmatprep.mubr.msk.bf16.mxu1 %vm3863_vm14, %v3438_v56  ;;  %vm886_vm14 = vcmp.eq.s32.totalorder %v3829_v39, %v3965_v34  ;;  %v845_v34 = vpop.permute.xlu1 %844  ;;  %v4131_v60 = vadd.f32 %v3971_v29, %v574_v33  ;;  %vm2635_vm0 = vmpackc.low %vm893_vm4, %vm892_vm10 }
 0x13c   :  { %3082 = vmatpush3.bf16.msra.mxu0 %v3340_v55  ;;  %3130 = vmatpush3.bf16.msra.mxu1 %v3341_v50  ;;  %vm2629_vm2 = vmpackc.low %vm887_vm11, %vm886_vm14  ;;  %v2963_v36 = vpop.f32.mrf.mxu1  ;;  %vm894_vm11 = vcmp.eq.s32.totalorder %v3829_v39, %v4103_v19  ;;  %vm896_vm14 = vcmp.eq.s32.totalorder %v3829_v39, %v842_v31  ;;  %v854_v61 = vpop.permute.xlu0 %853 }
 0x13d   :  { %3083 = vmatprep.subr.bf16.mxu0 %v3342_v4  ;;  %3131 = vmatprep.subr.bf16.mxu1 %v3343_v6  ;;  %675 = vst [vmem:[#allocation6 + $0x48] sm:$0xff] %v4131_v60  ;;  %v702_v63 = vpack.c.bf16 %v4131_v60, %v4107_v22  ;;  %v4141_v32 = vadd.f32 %v2963_v36, %v3971_v29  ;;  %v3365_v22 = vld [vmem:[#allocation2 + $0x10] sm:$0xff]  }
 0x13e   :  { %v587_v30 = vpop.f32.mrf.mxu1  ;;  %vm900_vm10 = vcmp.eq.s32.totalorder %v3829_v39, %v854_v61 }
 0x13f   :  { %680 = vst [vmem:[#allocation6 + $0x70] sm:$0xff] %v4141_v32  ;;  %v4149_v37 = vadd.f32 %v3971_v29, %v587_v30  ;;  %v851_v41 = vpop.permute.xlu1 %850 }
 0x140   :  { %3084 = vmatpush3.bf16.msra.mxu0 %v3342_v4  ;;  %3132 = vmatpush3.bf16.msra.mxu1 %v3343_v6  ;;  %v2964_v38 = vpop.f32.mrf.mxu1 }
 0x141   :  { %3085 = vmatprep.subr.bf16.mxu0 %v3344_v13  ;;  %3133 = vmatprep.subr.bf16.mxu1 %v3345_v57  ;;  %678 = vst [vmem:[#allocation6 + $0x60] sm:$0xff] %v4149_v37  ;;  %v4157_v43 = vadd.f32 %v2964_v38, %v3971_v29 }
 0x142   :  { %3006 = vmatmul.mubr.msk.bf16.gmra.mxu0 %vm2629_vm2, %v3438_v56  ;;  %3054 = vmatmul.mubr.msk.bf16.gmra.mxu1 %vm3869_vm1, %v3438_v56  ;;  %vm891_vm1 = vcmp.eq.s32.totalorder %v3829_v39, %v4004_v47  ;;  %v590_v46 = vpop.f32.mrf.mxu1  ;;  %vm4635_vm2 = vnez %v4622_v8 }
 0x143   :  { %3009 = vmatprep.mubr.msk.bf16.mxu0 %vm2631_vm7, %v3438_v56  ;;  %3057 = vmatprep.mubr.msk.bf16.mxu1 %vm3875_vm5, %v3438_v56  ;;  %vm890_vm5 = vcmp.eq.s32.totalorder %v3829_v39, %v4014_v49  ;;  %681 = vst [vmem:[#allocation6 + $0x78] sm:$0xff] %v4157_v43  ;;  %v705_v47 = vpack.c.bf16 %v4157_v43, %v4141_v32  ;;  %v857_v55 = vpop.permute.xlu1 %856  ;;  %vm4636_vm7 = vnez %v4624_v11 }
 0x144   :  { %3086 = vmatpush3.bf16.msra.mxu0 %v3344_v13  ;;  %3134 = vmatpush3.bf16.msra.mxu1 %v3345_v57  ;;  %vm2633_vm12 = vmpackc.low %vm891_vm1, %vm890_vm5  ;;  %v4167_v2 = vadd.f32 %v3971_v29, %v590_v46  ;;  %v2967_v49 = vpop.f32.mrf.mxu1  ;;  %vm899_vm1 = vcmp.eq.s32.totalorder %v3829_v39, %v851_v41  ;;  %vm898_vm5 = vcmp.eq.s32.totalorder %v3829_v39, %v848_v44  ;;  %v860_v13 = vpop.permute.xlu0 %859 }
 0x145   :  { %3087 = vmatprep.subr.bf16.mxu0 %v3346_v25  ;;  %3135 = vmatprep.subr.bf16.mxu1 %v3347_v27  ;;  %v4177_v51 = vadd.f32 %v2967_v49, %v3971_v29  ;;  %vm901_vm4 = vcmp.eq.s32.totalorder %v3829_v39, %v857_v55 }
 0x146   :  { %679 = vst [vmem:[#allocation6 + $0x68] sm:$0xff] %v4167_v2  ;;  %v704_v5 = vpack.c.bf16 %v4167_v2, %v4149_v37  ;;  %v603_v54 = vpop.f32.mrf.mxu1 }
 0x147   :  { %684 = vst [vmem:[#allocation6 + $0x90] sm:$0xff] %v4177_v51  ;;  %v4183_v50 = vadd.f32 %v3971_v29, %v603_v54  ;;  %v863_v9 = vpop.permute.xlu1 %862 }
 0x148   :  { %3088 = vmatpush3.bf16.msra.mxu0 %v3346_v25  ;;  %3136 = vmatpush3.bf16.msra.mxu1 %v3347_v27  ;;  %v2968_v62 = vpop.f32.mrf.mxu1  ;;  %v866_v33 = vpop.permute.xlu0 %865 }
 0x149   :  { %682 = vst [vmem:[#allocation6 + $0x80] sm:$0xff] %v4183_v50  ;;  %v4191_v1 = vadd.f32 %v2968_v62, %v3971_v29 }
 0x14a   :  { %3010 = vmatmul.mubr.msk.bf16.gmra.mxu0 %vm2633_vm12, %v3438_v56  ;;  %3058 = vmatmul.mubr.msk.bf16.gmra.mxu1 %vm3881_vm9, %v3438_v56  ;;  %vm895_vm9 = vcmp.eq.s32.totalorder %v3829_v39, %v4091_v15  ;;  %v606_v3 = vpop.f32.mrf.mxu1  ;;  %vm2641_vm12 = vmpackc.low %vm899_vm1, %vm898_vm5  ;;  %vm4639_vm1 = vnez %v4630_v20 }
 0x14b   :  { %3013 = vmatprep.mubr.msk.bf16.mxu0 %vm2635_vm0, %v3438_v56  ;;  %3061 = vmatprep.mubr.msk.bf16.mxu1 %vm3887_vm13, %v3438_v56  ;;  %vm897_vm13 = vcmp.eq.s32.totalorder %v3829_v39, %v845_v34  ;;  %vm2637_vm6 = vmpackc.low %vm895_vm9, %vm894_vm11  ;;  %685 = vst [vmem:[#allocation6 + $0x98] sm:$0xff] %v4191_v1  ;;  %v4201_v8 = vadd.f32 %v3971_v29, %v606_v3  ;;  %vm4637_vm9 = vnez %v4626_v14  ;;  %v869_v25 = vpop.permute.xlu1 %868 }
 0x14c   :  { %vm2639_vm15 = vmpackc.low %vm897_vm13, %vm896_vm14  ;;  %v2971_v6 = vpop.f32.mrf.mxu1  ;;  %vm4638_vm11 = vnez %v4628_v17  ;;  %vm903_vm13 = vcmp.eq.s32.totalorder %v3829_v39, %v863_v9  ;;  %vm902_vm14 = vcmp.eq.s32.totalorder %v3829_v39, %v860_v13  ;;  %v872_v46 = vpop.permute.xlu0 %871  ;;  %v4641_v42 = vpack.c.bf16 %v4191_v1, %v4177_v51 }
 0x14d   :  { %683 = vst [vmem:[#allocation6 + $0x88] sm:$0xff] %v4201_v8  ;;  %v4209_v12 = vadd.f32 %v2971_v6, %v3971_v29  ;;  %vm2643_vm0 = vmpackc.low %vm901_vm4, %vm900_vm10  ;;  %vm906_vm4 = vcmp.eq.s32.totalorder %v3829_v39, %v872_v46  ;;  %v4640_v40 = vpack.c.bf16 %v4201_v8, %v4183_v50 }
 0x14e   :  { %v619_v57 = vpop.f32.mrf.mxu1 }
 0x14f   :  { %688 = vst [vmem:[#allocation6 + $0xb0] sm:$0xff] %v4209_v12  ;;  %v4215_v15 = vadd.f32 %v3971_v29, %v619_v57  ;;  %v875_v41 = vpop.permute.xlu1 %874 }
 0x150   :  { %v2972_v19 = vpop.f32.mrf.mxu1  ;;  %vm907_vm5 = vcmp.eq.s32.totalorder %v3829_v39, %v875_v41 }
 0x151   :  { %686 = vst [vmem:[#allocation6 + $0xa0] sm:$0xff] %v4215_v15  ;;  %v4223_v21 = vadd.f32 %v2972_v19, %v3971_v29  ;;  %v3349_v19 = vld [vmem:[%s4597_s8 + $0x8] sm:$0xff]  }
 0x152   :  { %3014 = vmatmul.mubr.msk.bf16.gmra.mxu0 %vm2637_vm6, %v3438_v56  ;;  %3062 = vmatmul.mubr.msk.bf16.gmra.mxu1 %vm4635_vm2, %v3438_v56  ;;  %v622_v24 = vpop.f32.mrf.mxu1  ;;  %vm905_vm6 = vcmp.eq.s32.totalorder %v3829_v39, %v869_v25  ;;  %vm2645_vm2 = vmpackc.low %vm903_vm13, %vm902_vm14  ;;  %v3352_v25 = vld [vmem:[%s4599_s10 + $0x38] sm:$0xff]  }
 0x153   :  { %3017 = vmatprep.mubr.msk.bf16.mxu0 %vm2639_vm15, %v3438_v56  ;;  %3065 = vmatprep.mubr.msk.bf16.mxu1 %vm4636_vm7, %v3438_v56  ;;  %689 = vst [vmem:[#allocation6 + $0xb8] sm:$0xff] %v4223_v21  ;;  %v4233_v14 = vadd.f32 %v3971_v29, %v622_v24  ;;  %vm904_vm15 = vcmp.eq.s32.totalorder %v3829_v39, %v866_v33  ;;  %v3351_v24 = vld [vmem:[%s4597_s8] sm:$0xff]  }
 0x154   :  { %v2975_v34 = vpop.f32.mrf.mxu1  ;;  %vm2647_vm7 = vmpackc.low %vm905_vm6, %vm904_vm15  ;;  %3137 = vmatprep.subr.bf16.mxu1 %v3349_v19 }
 0x155   :  { %687 = vst [vmem:[#allocation6 + $0xa8] sm:$0xff] %v4233_v14  ;;  %v4241_v31 = vadd.f32 %v2975_v34, %v3971_v29  ;;  %3138 = vmatpush3.bf16.msra.mxu1 %v3349_v19  ;;  %v4642_v48 = vpack.c.bf16 %v4233_v14, %v4215_v15 }
 0x156   :  { %v635_v36 = vpop.f32.mrf.mxu1  ;;  %3139 = vmatprep.subr.bf16.mxu1 %v3351_v24 }
 0x157   :  { %692 = vst [vmem:[#allocation6 + $0xd0] sm:$0xff] %v4241_v31  ;;  %v4247_v30 = vadd.f32 %v3971_v29, %v635_v36 }
 0x158   :  { %v2976_v38 = vpop.f32.mrf.mxu1 }
 0x159   :  { %690 = vst [vmem:[#allocation6 + $0xc0] sm:$0xff] %v4247_v30  ;;  %v4255_v44 = vadd.f32 %v2976_v38, %v3971_v29  ;;  %3140 = vmatpush3.bf16.msra.mxu1 %v3351_v24  ;;  %v3353_v24 = vld [vmem:[%s4599_s10 + $0x30] sm:$0xff]  }
 0x15a   :  { %3018 = vmatmul.mubr.msk.bf16.gmra.mxu0 %vm2641_vm12, %v3438_v56  ;;  %3066 = vmatmul.mubr.msk.bf16.gmra.mxu1 %vm4637_vm9, %v3438_v56  ;;  %v638_v49 = vpop.f32.mrf.mxu1 }
 0x15b   :  { %3021 = vmatprep.mubr.msk.bf16.mxu0 %vm2643_vm0, %v3438_v56  ;;  %3069 = vmatprep.mubr.msk.bf16.mxu1 %vm4638_vm11, %v3438_v56  ;;  %693 = vst [vmem:[#allocation6 + $0xd8] sm:$0xff] %v4255_v44  ;;  %v4265_v20 = vadd.f32 %v3971_v29, %v638_v49  ;;  %v4645_v59 = vpack.c.bf16 %v4255_v44, %v4241_v31 }
 0x15c   :  { %v2979_v55 = vpop.f32.mrf.mxu1 }
 0x15d   :  { %691 = vst [vmem:[#allocation6 + $0xc8] sm:$0xff] %v4265_v20  ;;  %v4273_v61 = vadd.f32 %v2979_v55, %v3971_v29  ;;  %v4644_v52 = vpack.c.bf16 %v4265_v20, %v4247_v30 }
 0x15e   :  { %v651_v62 = vpop.f32.mrf.mxu1 }
 0x15f   :  { %696 = vst [vmem:[#allocation6 + $0xf0] sm:$0xff] %v4273_v61  ;;  %v4277_v3 = vadd.f32 %v3971_v29, %v651_v62 }
 0x160   :  { %v2980_v6 = vpop.f32.mrf.mxu1 }
 0x161   :  { %694 = vst [vmem:[#allocation6 + $0xe0] sm:$0xff] %v4277_v3  ;;  %v4285_v39 = vadd.f32 %v2980_v6, %v3971_v29 }
 0x162   :  { %3022 = vmatmul.mubr.msk.bf16.gmra.mxu0 %vm2645_vm2, %v3438_v56  ;;  %3070 = vmatmul.mubr.msk.bf16.gmra.mxu1 %vm4639_vm1, %v3438_v56  ;;  %v654_v9 = vpop.f32.mrf.mxu1 }
 0x163   :  { %3025 = vmatprep.mubr.msk.bf16.mxu0 %vm2647_vm7, %v3438_v56  ;;  %3073 = vmatprep.mubr.msk.bf16.mxu1 %vm3923_vm3, %v3438_v56  ;;  %vm2649_vm3 = vmpackc.low %vm907_vm5, %vm906_vm4  ;;  %697 = vst [vmem:[#allocation6 + $0xf8] sm:$0xff] %v4285_v39  ;;  %v4291_v57 = vadd.f32 %v3971_v29, %v654_v9  ;;  %v3350_v29 = vld [vmem:[%s4598_s9] sm:$0xff]   ;;  %v4647_v53 = vpack.c.bf16 %v4285_v39, %v4273_v61 }
 0x165   :  { %695 = vst [vmem:[#allocation6 + $0xe8] sm:$0xff] %v4291_v57  ;;  %v4646_v0 = vpack.c.bf16 %v4291_v57, %v4277_v3 }
 0x16a   :  { %3026 = vmatmul.mubr.msk.bf16.gmra.mxu0 %vm2649_vm3, %v3438_v56  ;;  %3074 = vmatmul.mubr.msk.bf16.gmra.mxu1 %vm3929_vm8, %v3438_v56  ;;  %v3348_v56 = vld [vmem:[%s4598_s9 + $0x8] sm:$0xff]  }
 0x16b   :  { %3089 = vmatprep.subr.bf16.mxu0 %v3348_v56 }
 0x16c   :  { %3090 = vmatpush3.bf16.msra.mxu0 %v3348_v56 }
 0x16d   :  { %3091 = vmatprep.subr.bf16.mxu0 %v3350_v29 }
 0x170   :  { %3092 = vmatpush3.bf16.msra.mxu0 %v3350_v29 }
 0x171   :  { %3173 = vmatprep.subr.bf16.mxu0 %v3352_v25 }
 0x1f2   :  { %v2999_v33 = vpop.f32.mrf.mxu0  ;;  %v3047_v34 = vpop.f32.mrf.mxu1 }
 0x1f4   :  { %v1166_v36 = vpop.f32.mrf.mxu0  ;;  %v1327_v38 = vpop.f32.mrf.mxu1 }
 0x1f6   :  { %v3000_v41 = vpop.f32.mrf.mxu0  ;;  %v3048_v46 = vpop.f32.mrf.mxu1 }
 0x1f7   :  { %v1455_v9 = vpack.c.bf16 %v3000_v41, %v2999_v33  ;;  %v1471_v56 = vpack.c.bf16 %v3048_v46, %v3047_v34  ;;  %v3354_v33 = vld [vmem:[%s4599_s10 + $0x28] sm:$0xff]  }
 0x1f8   :  { %v1169_v49 = vpop.f32.mrf.mxu0  ;;  %v1330_v55 = vpop.f32.mrf.mxu1 }
 0x1f9   :  { %v1454_v62 = vpack.c.bf16 %v1169_v49, %v1166_v36  ;;  %v1470_v6 = vpack.c.bf16 %v1330_v55, %v1327_v38 }
 0x1fa   :  { %v3003_v19 = vpop.f32.mrf.mxu0  ;;  %v3051_v29 = vpop.f32.mrf.mxu1 }
 0x1fb   :  { %3093 = vmatprep.mubr.bf16.mxu0 %v1470_v6  ;;  %3141 = vmatprep.mubr.bf16.mxu1 %v1454_v62 }
 0x1fc   :  { %v1182_v13 = vpop.f32.mrf.mxu0  ;;  %v1343_v26 = vpop.f32.mrf.mxu1  ;;  %3094 = vmatmul.mubr.bf16.vlgmr.msra.gmra.mxu0 %v1471_v56  ;;  %3142 = vmatmul.mubr.bf16.vlgmr.msra.gmra.mxu1 %v1455_v9 }
 0x1fd   :  { %3174 = vmatpush3.bf16.msra.mxu0 %v3352_v25  ;;  %v3355_v25 = vld [vmem:[%s4599_s10 + $0x20] sm:$0xff]  }
 0x1fe   :  { %v3004_v54 = vpop.f32.mrf.mxu0  ;;  %v3052_v23 = vpop.f32.mrf.mxu1  ;;  %3175 = vmatprep.subr.bf16.mxu0 %v3353_v24 }
 0x1ff   :  { %v1457_v46 = vpack.c.bf16 %v3004_v54, %v3003_v19  ;;  %v1473_v49 = vpack.c.bf16 %v3052_v23, %v3051_v29  ;;  %v3356_v54 = vld [vmem:[%s4599_s10 + $0x18] sm:$0xff]  }
 0x200   :  { %v1185_v34 = vpop.f32.mrf.mxu0  ;;  %v1346_v36 = vpop.f32.mrf.mxu1 }
 0x201   :  { %v1456_v38 = vpack.c.bf16 %v1185_v34, %v1182_v13  ;;  %v1472_v41 = vpack.c.bf16 %v1346_v36, %v1343_v26  ;;  %3176 = vmatpush3.bf16.msra.mxu0 %v3353_v24 }
 0x202   :  { %v3007_v55 = vpop.f32.mrf.mxu0  ;;  %v3055_v62 = vpop.f32.mrf.mxu1  ;;  %3177 = vmatprep.subr.bf16.mxu0 %v3354_v33 }
 0x203   :  { %3097 = vmatprep.mubr.bf16.mxu0 %v1472_v41  ;;  %3145 = vmatprep.mubr.bf16.mxu1 %v1456_v38 }
 0x204   :  { %v1198_v6 = vpop.f32.mrf.mxu0  ;;  %v1359_v9 = vpop.f32.mrf.mxu1  ;;  %3098 = vmatmul.mubr.bf16.gmra.mxu0 %v1473_v49  ;;  %3146 = vmatmul.mubr.bf16.gmra.mxu1 %v1457_v46 }
 0x205   :  { %3178 = vmatpush3.bf16.msra.mxu0 %v3354_v33  ;;  %v3357_v33 = vld [vmem:[%s4599_s10 + $0x10] sm:$0xff]  }
 0x206   :  { %v3008_v56 = vpop.f32.mrf.mxu0  ;;  %v3056_v13 = vpop.f32.mrf.mxu1  ;;  %3179 = vmatprep.subr.bf16.mxu0 %v3355_v25 }
 0x207   :  { %v1459_v24 = vpack.c.bf16 %v3008_v56, %v3007_v55  ;;  %v1475_v34 = vpack.c.bf16 %v3056_v13, %v3055_v62  ;;  %v3358_v55 = vld [vmem:[%s4599_s10 + $0x8] sm:$0xff]  }
 0x208   :  { %v1201_v23 = vpop.f32.mrf.mxu0  ;;  %v1362_v26 = vpop.f32.mrf.mxu1 }
 0x209   :  { %v1458_v19 = vpack.c.bf16 %v1201_v23, %v1198_v6  ;;  %v1474_v29 = vpack.c.bf16 %v1362_v26, %v1359_v9  ;;  %3180 = vmatpush3.bf16.msra.mxu0 %v3355_v25 }
 0x20a   :  { %v3011_v36 = vpop.f32.mrf.mxu0  ;;  %v3059_v38 = vpop.f32.mrf.mxu1  ;;  %3181 = vmatprep.subr.bf16.mxu0 %v3356_v54 }
 0x20b   :  { %3101 = vmatprep.mubr.bf16.mxu0 %v1474_v29  ;;  %3149 = vmatprep.mubr.bf16.mxu1 %v1458_v19 }
 0x20c   :  { %v1214_v41 = vpop.f32.mrf.mxu0  ;;  %v1375_v46 = vpop.f32.mrf.mxu1  ;;  %3102 = vmatmul.mubr.bf16.gmra.mxu0 %v1475_v34  ;;  %3150 = vmatmul.mubr.bf16.gmra.mxu1 %v1459_v24 }
 0x20d   :  { %3182 = vmatpush3.bf16.msra.mxu0 %v3356_v54  ;;  %v3359_v54 = vld [vmem:[%s4599_s10] sm:$0xff]  }
 0x20e   :  { %v3012_v49 = vpop.f32.mrf.mxu0  ;;  %v3060_v6 = vpop.f32.mrf.mxu1  ;;  %3183 = vmatprep.subr.bf16.mxu0 %v3357_v33 }
 0x20f   :  { %v1461_v13 = vpack.c.bf16 %v3012_v49, %v3011_v36  ;;  %v1477_v23 = vpack.c.bf16 %v3060_v6, %v3059_v38 }
 0x210   :  { %v1217_v62 = vpop.f32.mrf.mxu0  ;;  %v1378_v25 = vpop.f32.mrf.mxu1 }
 0x211   :  { %v1460_v9 = vpack.c.bf16 %v1217_v62, %v1214_v41  ;;  %v1476_v56 = vpack.c.bf16 %v1378_v25, %v1375_v46  ;;  %3184 = vmatpush3.bf16.msra.mxu0 %v3357_v33 }
 0x212   :  { %v3015_v26 = vpop.f32.mrf.mxu0  ;;  %v3063_v19 = vpop.f32.mrf.mxu1  ;;  %3185 = vmatprep.subr.bf16.mxu0 %v3358_v55 }
 0x213   :  { %3105 = vmatprep.mubr.bf16.mxu0 %v1476_v56  ;;  %3153 = vmatprep.mubr.bf16.mxu1 %v1460_v9 }
 0x214   :  { %v1230_v29 = vpop.f32.mrf.mxu0  ;;  %v1391_v24 = vpop.f32.mrf.mxu1  ;;  %3106 = vmatmul.mubr.bf16.gmra.mxu0 %v1477_v23  ;;  %3154 = vmatmul.mubr.bf16.gmra.mxu1 %v1461_v13 }
 0x215   :  { %3186 = vmatpush3.bf16.msra.mxu0 %v3358_v55 }
 0x216   :  { %v3016_v34 = vpop.f32.mrf.mxu0  ;;  %v3064_v41 = vpop.f32.mrf.mxu1  ;;  %3187 = vmatprep.subr.bf16.mxu0 %v3359_v54 }
 0x217   :  { %v1463_v49 = vpack.c.bf16 %v3016_v34, %v3015_v26  ;;  %v1479_v6 = vpack.c.bf16 %v3064_v41, %v3063_v19 }
 0x218   :  { %v1233_v33 = vpop.f32.mrf.mxu0  ;;  %v1394_v36 = vpop.f32.mrf.mxu1 }
 0x219   :  { %v1462_v38 = vpack.c.bf16 %v1233_v33, %v1230_v29  ;;  %v1478_v46 = vpack.c.bf16 %v1394_v36, %v1391_v24  ;;  %3188 = vmatpush3.bf16.msra.mxu0 %v3359_v54 }
 0x21a   :  { %v3019_v62 = vpop.f32.mrf.mxu0  ;;  %v3067_v25 = vpop.f32.mrf.mxu1 }
 0x21b   :  { %3109 = vmatprep.mubr.bf16.mxu0 %v1478_v46  ;;  %3157 = vmatprep.mubr.bf16.mxu1 %v1462_v38 }
 0x21c   :  { %v1246_v9 = vpop.f32.mrf.mxu0  ;;  %v1407_v56 = vpop.f32.mrf.mxu1  ;;  %3110 = vmatmul.mubr.bf16.gmra.mxu0 %v1479_v6  ;;  %3158 = vmatmul.mubr.bf16.gmra.mxu1 %v1463_v49 }
 0x21e   :  { %v3020_v13 = vpop.f32.mrf.mxu0  ;;  %v3068_v55 = vpop.f32.mrf.mxu1 }
 0x21f   :  { %v1465_v11 = vpack.c.bf16 %v3020_v13, %v3019_v62  ;;  %v1481_v29 = vpack.c.bf16 %v3068_v55, %v3067_v25 }
 0x220   :  { %v1249_v23 = vpop.f32.mrf.mxu0  ;;  %v1410_v27 = vpop.f32.mrf.mxu1 }
 0x221   :  { %v1464_v17 = vpack.c.bf16 %v1249_v23, %v1246_v9  ;;  %v1480_v4 = vpack.c.bf16 %v1410_v27, %v1407_v56 }
 0x222   :  { %v3023_v24 = vpop.f32.mrf.mxu0  ;;  %v3071_v54 = vpop.f32.mrf.mxu1 }
 0x223   :  { %3113 = vmatprep.mubr.bf16.mxu0 %v1480_v4  ;;  %3161 = vmatprep.mubr.bf16.mxu1 %v1464_v17 }
 0x224   :  { %v1262_v26 = vpop.f32.mrf.mxu0  ;;  %v1423_v19 = vpop.f32.mrf.mxu1  ;;  %3114 = vmatmul.mubr.bf16.gmra.mxu0 %v1481_v29  ;;  %3162 = vmatmul.mubr.bf16.gmra.mxu1 %v1465_v11 }
 0x226   :  { %v3024_v34 = vpop.f32.mrf.mxu0  ;;  %v3072_v41 = vpop.f32.mrf.mxu1 }
 0x227   :  { %v1467_v49 = vpack.c.bf16 %v3024_v34, %v3023_v24  ;;  %v1483_v6 = vpack.c.bf16 %v3072_v41, %v3071_v54 }
 0x228   :  { %v1265_v33 = vpop.f32.mrf.mxu0  ;;  %v1426_v36 = vpop.f32.mrf.mxu1 }
 0x229   :  { %v1466_v38 = vpack.c.bf16 %v1265_v33, %v1262_v26  ;;  %v1482_v46 = vpack.c.bf16 %v1426_v36, %v1423_v19 }
 0x22a   :  { %v3027_v9 = vpop.f32.mrf.mxu0  ;;  %v3075_v27 = vpop.f32.mrf.mxu1 }
 0x22b   :  { %3117 = vmatprep.mubr.bf16.mxu0 %v1482_v46  ;;  %3165 = vmatprep.mubr.bf16.mxu1 %v1466_v38 }
 0x22c   :  { %v1278_v62 = vpop.f32.mrf.mxu0  ;;  %v1439_v25 = vpop.f32.mrf.mxu1  ;;  %3118 = vmatmul.mubr.bf16.gmra.mxu0 %v1483_v6  ;;  %3166 = vmatmul.mubr.bf16.gmra.mxu1 %v1467_v49 }
 0x22e   :  { %v3028_v4 = vpop.f32.mrf.mxu0  ;;  %v3076_v17 = vpop.f32.mrf.mxu1 }
 0x22f   :  { %v1469_v23 = vpack.c.bf16 %v3028_v4, %v3027_v9  ;;  %v1485_v29 = vpack.c.bf16 %v3076_v17, %v3075_v27 }
 0x230   :  { %v1281_v56 = vpop.f32.mrf.mxu0  ;;  %v1442_v11 = vpop.f32.mrf.mxu1 }
 0x231   :  { %v1468_v13 = vpack.c.bf16 %v1281_v56, %v1278_v62  ;;  %v1484_v55 = vpack.c.bf16 %v1442_v11, %v1439_v25 }
 0x233   :  { %3121 = vmatprep.mubr.bf16.mxu0 %v1484_v55  ;;  %3169 = vmatprep.mubr.bf16.mxu1 %v1468_v13 }
 0x234   :  { %3122 = vmatmul.mubr.bf16.gmra.mxu0 %v1485_v29  ;;  %3170 = vmatmul.mubr.bf16.gmra.mxu1 %v1469_v23 }
 0x235   :  { %3189 = vmatprep.mubr.bf16.mxu0 %v698_v58  ;;  %v3360_v58 = vld [vmem:[#allocation2 + $0x38] sm:$0xff]  }
 0x236   :  { %3221 = vmatprep.subr.bf16.mxu0 %v3360_v58  ;;  %3269 = vmatprep.subr.bf16.mxu1 %v3360_v58 }
 0x237   :  { %3277 = vmatpush3.bf16.msra.mxu1 %v3360_v58 }
 0x238   :  { %3270 = vmatprep.subr.bf16.mxu1 %v3361_v7 }
 0x23b   :  { %3278 = vmatpush3.bf16.msra.mxu1 %v3361_v7 }
 0x23c   :  { %3190 = vmatmul.mubr.bf16.vlgmr.msra.gmra.mxu0 %v699_v45  ;;  %v4643_v45 = vpack.c.bf16 %v4223_v21, %v4209_v12 }
 0x23d   :  { %3193 = vmatprep.mubr.bf16.mxu0 %v700_v16  ;;  %3222 = vmatpush3.bf16.msra.mxu0 %v3360_v58  ;;  %v3363_v16 = vld [vmem:[#allocation2 + $0x20] sm:$0xff]  }
 0x23e   :  { %3223 = vmatprep.subr.bf16.mxu0 %v3361_v7 }
 0x241   :  { %3224 = vmatpush3.bf16.msra.mxu0 %v3361_v7 }
 0x244   :  { %3194 = vmatmul.mubr.bf16.gmra.mxu0 %v701_v10  ;;  %v3362_v10 = vld [vmem:[#allocation2 + $0x28] sm:$0xff]  }
 0x245   :  { %3197 = vmatprep.mubr.bf16.mxu0 %v702_v63  ;;  %3225 = vmatprep.subr.bf16.mxu0 %v3362_v10 }
 0x246   :  { %3226 = vmatpush3.bf16.msra.mxu0 %v3362_v10  ;;  %3271 = vmatprep.subr.bf16.mxu1 %v3362_v10 }
 0x247   :  { %3279 = vmatpush3.bf16.msra.mxu1 %v3362_v10  ;;  %3227 = vmatprep.subr.bf16.mxu0 %v3363_v16 }
 0x248   :  { %3272 = vmatprep.subr.bf16.mxu1 %v3363_v16 }
 0x24a   :  { %3228 = vmatpush3.bf16.msra.mxu0 %v3363_v16 }
 0x24b   :  { %3280 = vmatpush3.bf16.msra.mxu1 %v3363_v16  ;;  %3229 = vmatprep.subr.bf16.mxu0 %v3364_v18 }
 0x24c   :  { %3198 = vmatmul.mubr.bf16.gmra.mxu0 %v703_v35  ;;  %3273 = vmatprep.subr.bf16.mxu1 %v3364_v18  ;;  %v3367_v35 = vld [vmem:[#allocation2] sm:$0xff]  }
 0x24d   :  { %3201 = vmatprep.mubr.bf16.mxu0 %v704_v5 }
 0x24e   :  { %3230 = vmatpush3.bf16.msra.mxu0 %v3364_v18 }
 0x24f   :  { %3281 = vmatpush3.bf16.msra.mxu1 %v3364_v18  ;;  %3231 = vmatprep.subr.bf16.mxu0 %v3365_v22 }
 0x250   :  { %3274 = vmatprep.subr.bf16.mxu1 %v3365_v22 }
 0x252   :  { %3232 = vmatpush3.bf16.msra.mxu0 %v3365_v22 }
 0x253   :  { %3282 = vmatpush3.bf16.msra.mxu1 %v3365_v22  ;;  %3233 = vmatprep.subr.bf16.mxu0 %v3366_v28 }
 0x254   :  { %3202 = vmatmul.mubr.bf16.gmra.mxu0 %v705_v47  ;;  %3275 = vmatprep.subr.bf16.mxu1 %v3366_v28 }
 0x255   :  { %3205 = vmatprep.mubr.bf16.mxu0 %v4640_v40 }
 0x256   :  { %3234 = vmatpush3.bf16.msra.mxu0 %v3366_v28 }
 0x257   :  { %3283 = vmatpush3.bf16.msra.mxu1 %v3366_v28  ;;  %3235 = vmatprep.subr.bf16.mxu0 %v3367_v35 }
 0x258   :  { %3276 = vmatprep.subr.bf16.mxu1 %v3367_v35 }
 0x25a   :  { %3236 = vmatpush3.bf16.msra.mxu0 %v3367_v35 }
 0x25b   :  { %3284 = vmatpush3.bf16.msra.mxu1 %v3367_v35 }
 0x25c   :  { %3206 = vmatmul.mubr.bf16.gmra.mxu0 %v4641_v42 }
 0x25d   :  { %3209 = vmatprep.mubr.bf16.mxu0 %v4642_v48 }
 0x264   :  { %3210 = vmatmul.mubr.bf16.gmra.mxu0 %v4643_v45 }
 0x265   :  { %3213 = vmatprep.mubr.bf16.mxu0 %v4644_v52 }
 0x26c   :  { %3214 = vmatmul.mubr.bf16.gmra.mxu0 %v4645_v59  ;;  %v4455_v59 = vld [vmem:[%s4600_s11] ss:$0 sm:$0xff]  ;;  %s3439_s11 = smov [#allocation6]  }
 0x26d   :  { %3217 = vmatprep.mubr.bf16.mxu0 %v4646_v0  ;;  %s2561_s30 = sshll.u32 %s3439_s11, 4  ;;  %s2562_s30 = int_to_ptr.vmem [resolvable:$true] %s2561_s30 }
 0x26e   :  { %s3388_s2 = scalar_lea.vmem %s2562_s30, 4096  ;;  %p3393_p6 = scmp.lt.s32.totalorder %s2562_s30, %s2562_s30 }
 0x26f   :  { %p3389_p5 = scmp.ne.s32.totalorder %s2562_s30, %s3388_s2  ;;  %p3394_p7 = scmp.lt.s32.totalorder %s3388_s2, %s3388_s2 }
 0x271   :  { %p3395_p8 = por %p3394_p7, %p3393_p6 }
 0x273   :  { %p3396_p9 = pnand %p3395_p8, %p3389_p5 }
 0x274   :  { %3218 = vmatmul.mubr.bf16.gmra.mxu0 %v4647_v53 }
 0x2bc   :  { %v3095_v60 = vpop.f32.mrf.mxu0  ;;  %v3143_v63 = vpop.f32.mrf.mxu1 }
 0x2bd   :  { %v1818_v42 = vadd.f32 %v3143_v63, %v3095_v60 }
 0x2be   :  { %v1600_v32 = vpop.f32.mrf.mxu0  ;;  %v1809_v37 = vpop.f32.mrf.mxu1 }
 0x2bf   :  { %v1810_v45 = vadd.f32 %v1809_v37, %v1600_v32 }
 0x2c0   :  { %v3096_v43 = vpop.f32.mrf.mxu0  ;;  %v3144_v47 = vpop.f32.mrf.mxu1 }
 0x2c1   :  { %v1821_v7 = vadd.f32 %v3144_v47, %v3096_v43 }
 0x2c2   :  { %v1603_v2 = vpop.f32.mrf.mxu0  ;;  %v1812_v51 = vpop.f32.mrf.mxu1 }
 0x2c3   :  { %v1813_v16 = vadd.f32 %v1812_v51, %v1603_v2 }
 0x2c4   :  { %v3099_v5 = vpop.f32.mrf.mxu0  ;;  %v3147_v8 = vpop.f32.mrf.mxu1 }
 0x2c5   :  { %v1834_v60 = vadd.f32 %v3147_v8, %v3099_v5 }
 0x2c6   :  { %v1616_v50 = vpop.f32.mrf.mxu0  ;;  %v1825_v21 = vpop.f32.mrf.mxu1 }
 0x2c8   :  { %v4380_v1 = vpop.f32.mrf.mxu0  ;;  %v3148_v30 = vpop.f32.mrf.mxu1 }
 0x2c9   :  { %v1837_v2 = vadd.f32 %v3148_v30, %v4380_v1 }
 0x2ca   :  { %v4382_v12 = vpop.f32.mrf.mxu0  ;;  %v1828_v61 = vpop.f32.mrf.mxu1 }
 0x2cc   :  { %v4384_v15 = vpop.f32.mrf.mxu0  ;;  %v4398_v57 = vpop.f32.mrf.mxu1 }
 0x2cd   :  { %v1850_v1 = vadd.f32 %v4398_v57, %v4384_v15 }
 0x2ce   :  { %v4386_v14 = vpop.f32.mrf.mxu0  ;;  %v4404_v26 = vpop.f32.mrf.mxu1 }
 0x2d0   :  { %v4388_v31 = vpop.f32.mrf.mxu0  ;;  %v4410_v41 = vpop.f32.mrf.mxu1 }
 0x2d2   :  { %v4390_v44 = vpop.f32.mrf.mxu0  ;;  %v4416_v38 = vpop.f32.mrf.mxu1 }
 0x2d4   :  { %v4392_v20 = vpop.f32.mrf.mxu0  ;;  %v4422_v6 = vpop.f32.mrf.mxu1 }
 0x2d6   :  { %v4394_v3 = vpop.f32.mrf.mxu0  ;;  %v4428_v62 = vpop.f32.mrf.mxu1 }
 0x2d8   :  { %v4396_v39 = vpop.f32.mrf.mxu0  ;;  %v4434_v17 = vpop.f32.mrf.mxu1 }
 0x2da   :  { %v4400_v24 = vpop.f32.mrf.mxu0  ;;  %v4440_v13 = vpop.f32.mrf.mxu1 }
 0x2dc   :  { %v4402_v54 = vpop.f32.mrf.mxu0  ;;  %v4446_v29 = vpop.f32.mrf.mxu1 }
 0x2de   :  { %v4406_v19 = vpop.f32.mrf.mxu0  ;;  %v4450_v58 = vpop.f32.mrf.mxu1 }
 0x2e0   :  { %v4408_v34 = vpop.f32.mrf.mxu0  ;;  %v4458_v28 = vpop.f32.mrf.mxu1 }
 0x2e2   :  { %v4412_v33 = vpop.f32.mrf.mxu0  ;;  %v4464_v51 = vpop.f32.mrf.mxu1 }
 0x2e4   :  { %v4414_v36 = vpop.f32.mrf.mxu0 }
 0x2e6   :  { %v4418_v46 = vpop.f32.mrf.mxu0 }
 0x2e8   :  { %v4420_v49 = vpop.f32.mrf.mxu0 }
 0x2ea   :  { %v4424_v9 = vpop.f32.mrf.mxu0 }
 0x2ec   :  { %v4426_v27 = vpop.f32.mrf.mxu0 }
 0x2ee   :  { %v4430_v25 = vpop.f32.mrf.mxu0 }
 0x2f0   :  { %v4432_v4 = vpop.f32.mrf.mxu0 }
 0x2f2   :  { %v4436_v56 = vpop.f32.mrf.mxu0 }
 0x2f4   :  { %v4438_v11 = vpop.f32.mrf.mxu0 }
 0x2f6   :  { %v4442_v55 = vpop.f32.mrf.mxu0 }
 0x2f8   :  { %v4444_v23 = vpop.f32.mrf.mxu0 }
 0x2f9   :  { %4648 = vst [vmem:[#allocation11_spill] sm:$0xff] %v4444_v23 }
 0x2fa   :  { %v4448_v40 = vpop.f32.mrf.mxu0 }
 0x2fb   :  { %4649 = vst [vmem:[#allocation12_spill] sm:$0xff] %v4448_v40 }
 0x2fc   :  { %v3191_v48 = vpop.f32.mrf.mxu0 }
 0x2fd   :  { %v2163_v52 = vadd.f32 %v3191_v48, %v1818_v42  ;;  %v1826_v42 = vadd.f32 %v1825_v21, %v1616_v50 }
 0x2fe   :  { %v2034_v0 = vpop.f32.mrf.mxu0 }
 0x2ff   :  { %v2161_v10 = vadd.f32 %v2034_v0, %v1810_v45  ;;  %v2202_v18 = vadd.f32 %v4455_v59, %v2163_v52 }
 0x300   :  { %v3192_v53 = vpop.f32.mrf.mxu0 }
 0x301   :  { %v2164_v22 = vadd.f32 %v3192_v53, %v1821_v7  ;;  %v2200_v63 = vadd.f32 %v4455_v59, %v2161_v10  ;;  %v2234_v40 = vmax.f32 %v2202_v18, 0.0  ;;  %v1829_v10 = vadd.f32 %v1828_v61, %v4382_v12 }
 0x302   :  { %v2037_v35 = vpop.f32.mrf.mxu0 }
 0x303   :  { %v2203_v32 = vadd.f32 %v4455_v59, %v2164_v22  ;;  %v2162_v37 = vadd.f32 %v2037_v35, %v1813_v16  ;;  %v2232_v52 = vmax.f32 %v2200_v63, 0.0  ;;  %v4468_v16 = vpop.f32.mrf.mxu1 }
 0x304   :  { %v3195_v48 = vpop.f32.mrf.mxu0 }
 0x305   :  { %v2235_v23 = vmax.f32 %v2203_v32, 0.0  ;;  %v2201_v43 = vadd.f32 %v4455_v59, %v2162_v37  ;;  %v2167_v47 = vadd.f32 %v3195_v48, %v1834_v60  ;;  %v1853_v32 = vadd.f32 %v4410_v41, %v4388_v31  ;;  %v4479_v15 = vpop.f32.mrf.mxu1 }
 0x306   :  { %v2050_v45 = vpop.f32.mrf.mxu0  ;;  %v1866_v31 = vadd.f32 %v4422_v6, %v4392_v20 }
 0x307   :  { %v2265_v0 = vpack.c.bf16 %v2235_v23, %v2234_v40  ;;  %v2233_v5 = vmax.f32 %v2201_v43, 0.0  ;;  %v2165_v8 = vadd.f32 %v2050_v45, %v1826_v42  ;;  %v2206_v50 = vadd.f32 %v4455_v59, %v2167_v47 }
 0x308   :  { %v3196_v7 = vpop.f32.mrf.mxu0  ;;  %v1842_v40 = vadd.f32 %v4404_v26, %v4386_v14  ;;  %v1845_v14 = vadd.f32 %v4416_v38, %v4390_v44 }
 0x309   :  { %v2168_v21 = vadd.f32 %v3196_v7, %v1837_v2  ;;  %v2264_v53 = vpack.c.bf16 %v2233_v5, %v2232_v52  ;;  %v2204_v30 = vadd.f32 %v4455_v59, %v2165_v8  ;;  %v2238_v61 = vmax.f32 %v2206_v50, 0.0  ;;  %v4484_v52 = vpop.f32.mrf.mxu1 }
 0x30a   :  { %v2053_v18 = vpop.f32.mrf.mxu0  ;;  %v1858_v7 = vadd.f32 %v4428_v62, %v4394_v3  ;;  %v1861_v3 = vadd.f32 %v4440_v13, %v4400_v24 }
 0x30b   :  { %v2207_v22 = vadd.f32 %v4455_v59, %v2168_v21  ;;  %v2166_v23 = vadd.f32 %v2053_v18, %v1829_v10  ;;  %3237 = vmatprep.mubr.bf16.mxu0 %v2264_v53  ;;  %v2236_v37 = vmax.f32 %v2204_v30, 0.0  ;;  %v1869_v53 = vadd.f32 %v4434_v17, %v4396_v39  ;;  %v1892_v20 = vpop.f32.mrf.mxu1 }
 0x30c   :  { %v3199_v12 = vpop.f32.mrf.mxu0  ;;  %3238 = vmatmul.mubr.bf16.vlgmr.msra.gmra.mxu0 %v2265_v0 }
 0x30d   :  { %v2239_v35 = vmax.f32 %v2207_v22, 0.0  ;;  %v2205_v60 = vadd.f32 %v4455_v59, %v2166_v23  ;;  %v2171_v63 = vadd.f32 %v3199_v12, %v1850_v1 }
 0x30e   :  { %v2066_v57 = vpop.f32.mrf.mxu0 }
 0x30f   :  { %v2267_v42 = vpack.c.bf16 %v2239_v35, %v2238_v61  ;;  %v2237_v48 = vmax.f32 %v2205_v60, 0.0  ;;  %v2169_v43 = vadd.f32 %v2066_v57, %v1842_v40  ;;  %v2210_v26 = vadd.f32 %v4455_v59, %v2171_v63  ;;  %v3167_v61 = vpop.f32.mrf.mxu1 }
 0x310   :  { %v3200_v47 = vpop.f32.mrf.mxu0  ;;  %v1882_v60 = vadd.f32 %v4446_v29, %v4402_v54 }
 0x311   :  { %v2172_v2 = vadd.f32 %v3200_v47, %v1853_v32  ;;  %v2266_v45 = vpack.c.bf16 %v2237_v48, %v2236_v37  ;;  %v2208_v41 = vadd.f32 %v4455_v59, %v2169_v43  ;;  %v2242_v38 = vmax.f32 %v2210_v26, 0.0  ;;  %v1905_v54 = vpop.f32.mrf.mxu1 }
 0x312   :  { %v2069_v0 = vpop.f32.mrf.mxu0  ;;  %v1874_v32 = vadd.f32 %v4450_v58, %v4406_v19  ;;  %v1885_v48 = vadd.f32 %v4458_v28, %v4408_v34  ;;  %v1877_v19 = vadd.f32 %v4464_v51, %v4412_v33 }
 0x313   :  { %v2211_v5 = vadd.f32 %v4455_v59, %v2172_v2  ;;  %v2170_v8 = vadd.f32 %v2069_v0, %v1845_v14  ;;  %3241 = vmatprep.mubr.bf16.mxu0 %v2266_v45  ;;  %v2240_v18 = vmax.f32 %v2208_v41, 0.0 }
 0x314   :  { %v3203_v44 = vpop.f32.mrf.mxu0  ;;  %3242 = vmatmul.mubr.bf16.gmra.mxu0 %v2267_v42 }
 0x315   :  { %v2243_v10 = vmax.f32 %v2211_v5, 0.0  ;;  %v2209_v50 = vadd.f32 %v4455_v59, %v2170_v8  ;;  %v2175_v21 = vadd.f32 %v3203_v44, %v1866_v31  ;;  %v3168_v31 = vpop.f32.mrf.mxu1  ;;  %v1898_v5 = vadd.f32 %v4468_v16, %v4414_v36 }
 0x316   :  { %v2082_v6 = vpop.f32.mrf.mxu0 }
 0x317   :  { %v2269_v1 = vpack.c.bf16 %v2243_v10, %v2242_v38  ;;  %v2241_v30 = vmax.f32 %v2209_v50, 0.0  ;;  %v2173_v22 = vadd.f32 %v2082_v6, %v1858_v7  ;;  %v2214_v62 = vadd.f32 %v4455_v59, %v2175_v21  ;;  %v1908_v36 = vpop.f32.mrf.mxu1 }
 0x318   :  { %v3204_v23 = vpop.f32.mrf.mxu0  ;;  %v1890_v7 = vadd.f32 %v4479_v15, %v4418_v46  ;;  %v1901_v50 = vadd.f32 %v4484_v52, %v4420_v49 }
 0x319   :  { %v2176_v40 = vadd.f32 %v3204_v23, %v1869_v53  ;;  %v2268_v12 = vpack.c.bf16 %v2241_v30, %v2240_v18  ;;  %v2212_v39 = vadd.f32 %v4455_v59, %v2173_v22  ;;  %v2246_v24 = vmax.f32 %v2214_v62, 0.0  ;;  %v3171_v23 = vpop.f32.mrf.mxu1 }
 0x31a   :  { %v2085_v35 = vpop.f32.mrf.mxu0  ;;  %v1893_v30 = vadd.f32 %v1892_v20, %v4424_v9  ;;  %v1914_v62 = vadd.f32 %v3167_v61, %v4426_v27 }
 0x31b   :  { %v2215_v17 = vadd.f32 %v4455_v59, %v2176_v40  ;;  %v2174_v63 = vadd.f32 %v2085_v35, %v1861_v3  ;;  %3245 = vmatprep.mubr.bf16.mxu1 %v2268_v12  ;;  %v2244_v43 = vmax.f32 %v2212_v39, 0.0  ;;  %v1906_v12 = vadd.f32 %v1905_v54, %v4430_v25 }
 0x31c   :  { %v3207_v57 = vpop.f32.mrf.mxu0  ;;  %3246 = vmatmul.mubr.bf16.vlgmr.msra.gmra.mxu1 %v2269_v1 }
 0x31d   :  { %v2247_v13 = vmax.f32 %v2215_v17, 0.0  ;;  %v2213_v37 = vadd.f32 %v4455_v59, %v2174_v63  ;;  %v2179_v42 = vadd.f32 %v3207_v57, %v1882_v60  ;;  %v1917_v17 = vadd.f32 %v3168_v31, %v4432_v4  ;;  %v1921_v63 = vpop.f32.mrf.mxu1 }
 0x31e   :  { %v2098_v29 = vpop.f32.mrf.mxu0 }
 0x31f   :  { %v2245_v47 = vmax.f32 %v2213_v37, 0.0  ;;  %v2177_v14 = vadd.f32 %v2098_v29, %v1874_v32  ;;  %v2271_v26 = vpack.c.bf16 %v2247_v13, %v2246_v24  ;;  %v2218_v58 = vadd.f32 %v4455_v59, %v2179_v42  ;;  %v3172_v54 = vpop.f32.mrf.mxu1 }
 0x320   :  { %v3208_v2 = vpop.f32.mrf.mxu0  ;;  %v1909_v37 = vadd.f32 %v1908_v36, %v4436_v56 }
 0x321   :  { %v2180_v45 = vadd.f32 %v3208_v2, %v1885_v48  ;;  %v2270_v0 = vpack.c.bf16 %v2245_v47, %v2244_v43  ;;  %v2216_v34 = vadd.f32 %v4455_v59, %v2177_v14  ;;  %v2250_v33 = vmax.f32 %v2218_v58, 0.0 }
 0x322   :  { %v2101_v41 = vpop.f32.mrf.mxu0  ;;  %v1930_v43 = vadd.f32 %v3171_v23, %v4438_v11 }
 0x323   :  { %v2219_v28 = vadd.f32 %v4455_v59, %v2180_v45  ;;  %v2178_v8 = vadd.f32 %v2101_v41, %v1877_v19  ;;  %3249 = vmatprep.mubr.bf16.mxu1 %v2270_v0  ;;  %v2248_v21 = vmax.f32 %v2216_v34, 0.0  ;;  %v4650_v0 = vld [vmem:[#allocation11_spill] sm:$0xff]  ;;  %v1924_v41 = vpop.f32.mrf.mxu1 }
 0x324   :  { %v3211_v44 = vpop.f32.mrf.mxu0  ;;  %3250 = vmatmul.mubr.bf16.gmra.mxu1 %v2271_v26  ;;  %v1922_v26 = vadd.f32 %v1921_v63, %v4442_v55  ;;  %v1933_v31 = vadd.f32 %v3172_v54, %v4650_v0 }
 0x325   :  { %v2251_v51 = vmax.f32 %v2219_v28, 0.0  ;;  %v2217_v38 = vadd.f32 %v4455_v59, %v2178_v8  ;;  %v2183_v10 = vadd.f32 %v3211_v44, %v1898_v5  ;;  %v4651_v44 = vld [vmem:[#allocation12_spill] sm:$0xff] }
 0x326   :  { %v2114_v16 = vpop.f32.mrf.mxu0 }
 0x327   :  { %v2249_v53 = vmax.f32 %v2217_v38, 0.0  ;;  %v2181_v6 = vadd.f32 %v2114_v16, %v1890_v7  ;;  %v2273_v18 = vpack.c.bf16 %v2251_v51, %v2250_v33  ;;  %v2222_v46 = vadd.f32 %v4455_v59, %v2183_v10 }
 0x328   :  { %v3212_v1 = vpop.f32.mrf.mxu0  ;;  %v1925_v33 = vadd.f32 %v1924_v41, %v4651_v44 }
 0x329   :  { %v2184_v15 = vadd.f32 %v3212_v1, %v1901_v50  ;;  %v2272_v22 = vpack.c.bf16 %v2249_v53, %v2248_v21  ;;  %v2220_v40 = vadd.f32 %v4455_v59, %v2181_v6  ;;  %v2254_v60 = vmax.f32 %v2222_v46, 0.0 }
 0x32a   :  { %v2117_v3 = vpop.f32.mrf.mxu0 }
 0x32b   :  { %v2223_v49 = vadd.f32 %v4455_v59, %v2184_v15  ;;  %v2182_v52 = vadd.f32 %v2117_v3, %v1893_v30  ;;  %3253 = vmatprep.mubr.bf16.mxu1 %v2272_v22  ;;  %v2252_v27 = vmax.f32 %v2220_v40, 0.0 }
 0x32c   :  { %v3215_v35 = vpop.f32.mrf.mxu0  ;;  %3254 = vmatmul.mubr.bf16.gmra.mxu1 %v2273_v18 }
 0x32d   :  { %v2255_v9 = vmax.f32 %v2223_v49, 0.0  ;;  %v2221_v20 = vadd.f32 %v4455_v59, %v2182_v52  ;;  %v2187_v39 = vadd.f32 %v3215_v35, %v1914_v62 }
 0x32e   :  { %v2130_v32 = vpop.f32.mrf.mxu0 }
 0x32f   :  { %v2253_v61 = vmax.f32 %v2221_v20, 0.0  ;;  %v2185_v57 = vadd.f32 %v2130_v32, %v1906_v12  ;;  %v2275_v24 = vpack.c.bf16 %v2255_v9, %v2254_v60  ;;  %v2226_v25 = vadd.f32 %v4455_v59, %v2187_v39 }
 0x330   :  { %v3216_v13 = vpop.f32.mrf.mxu0 }
 0x331   :  { %v2188_v42 = vadd.f32 %v3216_v13, %v1917_v17  ;;  %v2274_v48 = vpack.c.bf16 %v2253_v61, %v2252_v27  ;;  %v2224_v47 = vadd.f32 %v4455_v59, %v2185_v57  ;;  %v2258_v19 = vmax.f32 %v2226_v25, 0.0 }
 0x332   :  { %v2133_v29 = vpop.f32.mrf.mxu0 }
 0x333   :  { %v2227_v4 = vadd.f32 %v4455_v59, %v2188_v42  ;;  %v2186_v14 = vadd.f32 %v2133_v29, %v1909_v37  ;;  %3257 = vmatprep.mubr.bf16.mxu1 %v2274_v48  ;;  %v2256_v11 = vmax.f32 %v2224_v47, 0.0 }
 0x334   :  { %v3219_v2 = vpop.f32.mrf.mxu0  ;;  %3258 = vmatmul.mubr.bf16.gmra.mxu1 %v2275_v24 }
 0x335   :  { %v2259_v56 = vmax.f32 %v2227_v4, 0.0  ;;  %v2225_v58 = vadd.f32 %v4455_v59, %v2186_v14  ;;  %v2191_v45 = vadd.f32 %v3219_v2, %v1930_v43 }
 0x336   :  { %v2146_v5 = vpop.f32.mrf.mxu0 }
 0x337   :  { %v2277_v34 = vpack.c.bf16 %v2259_v56, %v2258_v19  ;;  %v2257_v28 = vmax.f32 %v2225_v58, 0.0  ;;  %v2189_v8 = vadd.f32 %v2146_v5, %v1922_v26  ;;  %v2230_v55 = vadd.f32 %v4455_v59, %v2191_v45 }
 0x338   :  { %v3220_v7 = vpop.f32.mrf.mxu0 }
 0x339   :  { %v2192_v51 = vadd.f32 %v3220_v7, %v1933_v31  ;;  %v2276_v38 = vpack.c.bf16 %v2257_v28, %v2256_v11  ;;  %v2228_v50 = vadd.f32 %v4455_v59, %v2189_v8  ;;  %v2262_v21 = vmax.f32 %v2230_v55, 0.0 }
 0x33a   :  { %v2149_v10 = vpop.f32.mrf.mxu0 }
 0x33b   :  { %v2231_v36 = vadd.f32 %v4455_v59, %v2192_v51  ;;  %v2190_v16 = vadd.f32 %v2149_v10, %v1925_v33  ;;  %3261 = vmatprep.mubr.bf16.mxu1 %v2276_v38  ;;  %v2260_v18 = vmax.f32 %v2228_v50, 0.0 }
 0x33c   :  { %3262 = vmatmul.mubr.bf16.gmra.mxu1 %v2277_v34 }
 0x33d   :  { %v2263_v53 = vmax.f32 %v2231_v36, 0.0  ;;  %v2229_v6 = vadd.f32 %v4455_v59, %v2190_v16 }
 0x33f   :  { %v2279_v1 = vpack.c.bf16 %v2263_v53, %v2262_v21  ;;  %v2261_v30 = vmax.f32 %v2229_v6, 0.0 }
 0x341   :  { %v2278_v46 = vpack.c.bf16 %v2261_v30, %v2260_v18 }
 0x343   :  { %3265 = vmatprep.mubr.bf16.mxu1 %v2278_v46 }
 0x344   :  { %3266 = vmatmul.mubr.bf16.gmra.mxu1 %v2279_v1 }
 0x345   :  { %3399 = shalt.err (!%p3396_p9)
}
 0x346   :  { %s3440_s12 = smov 128   ;;  %s3441_s16 = smov 8   ;;  %v4549_v59 = vld [vmem:[%s4602_s13] ss:$0 sm:$0xff] }
 0x347   :  { %2567 = dma.vmem_to_hbm [thread:$0]  %s2562_s30, 4096, %s4604_s15, [#allocation7], %s3440_s12, %s3440_s12, %s3441_s16  }
 0x348   :  { %s3442_s13 = smov [#allocation5]  }
 0x349   :  { %s2549_s15 = sshll.u32 %s3442_s13, 4  ;;  %s2550_s15 = int_to_ptr.vmem [resolvable:$true] %s2549_s15 }
 0x34a   :  { %s3408_s20 = scalar_lea.vmem %s2550_s15, 4096  ;;  %p3413_p11 = scmp.lt.s32.totalorder %s2550_s15, %s2550_s15 }
 0x34b   :  { %p3409_p10 = scmp.ne.s32.totalorder %s2550_s15, %s3408_s20  ;;  %p3414_p12 = scmp.lt.s32.totalorder %s3408_s20, %s3408_s20 }
 0x34d   :  { %p3415_p13 = por %p3414_p12, %p3413_p11 }
 0x34f   :  { %p3416_p0 = pnand %p3415_p13, %p3409_p10 }
 0x3cc   :  { %v3239_v15 = vpop.f32.mrf.mxu0 }
 0x3cd   :  { %v2394_v22 = vadd.f32 %v3239_v15, %v4549_v59 }
 0x3ce   :  { %v2385_v23 = vpop.f32.mrf.mxu0 }
 0x3cf   :  { %2514 = vst [vmem:[#allocation5 + $0x10] sm:$0xff] %v2394_v22  ;;  %v2386_v3 = vadd.f32 %v4549_v59, %v2385_v23 }
 0x3d0   :  { %v3240_v62 = vpop.f32.mrf.mxu0 }
 0x3d1   :  { %2512 = vst [vmem:[#allocation5] sm:$0xff] %v2386_v3  ;;  %v2397_v40 = vadd.f32 %v3240_v62, %v4549_v59 }
 0x3d2   :  { %v2388_v49 = vpop.f32.mrf.mxu0 }
 0x3d3   :  { %2515 = vst [vmem:[#allocation5 + $0x18] sm:$0xff] %v2397_v40  ;;  %v2389_v52 = vadd.f32 %v4549_v59, %v2388_v49 }
 0x3d4   :  { %v3243_v12 = vpop.f32.mrf.mxu0 }
 0x3d5   :  { %2513 = vst [vmem:[#allocation5 + $0x8] sm:$0xff] %v2389_v52  ;;  %v2410_v35 = vadd.f32 %v3243_v12, %v4549_v59 }
 0x3d6   :  { %v2401_v60 = vpop.f32.mrf.mxu0 }
 0x3d7   :  { %2518 = vst [vmem:[#allocation5 + $0x30] sm:$0xff] %v2410_v35  ;;  %v2402_v9 = vadd.f32 %v4549_v59, %v2401_v60 }
 0x3d8   :  { %v3244_v20 = vpop.f32.mrf.mxu0 }
 0x3d9   :  { %2516 = vst [vmem:[#allocation5 + $0x20] sm:$0xff] %v2402_v9  ;;  %v2413_v39 = vadd.f32 %v3244_v20, %v4549_v59 }
 0x3da   :  { %v2404_v17 = vpop.f32.mrf.mxu0 }
 0x3db   :  { %2519 = vst [vmem:[#allocation5 + $0x38] sm:$0xff] %v2413_v39  ;;  %v2405_v63 = vadd.f32 %v4549_v59, %v2404_v17 }
 0x3dc   :  { %v3247_v32 = vpop.f32.mrf.mxu1 }
 0x3dd   :  { %2517 = vst [vmem:[#allocation5 + $0x28] sm:$0xff] %v2405_v63  ;;  %v2426_v27 = vadd.f32 %v3247_v32, %v4549_v59 }
 0x3de   :  { %v2417_v61 = vpop.f32.mrf.mxu1 }
 0x3df   :  { %2522 = vst [vmem:[#allocation5 + $0x50] sm:$0xff] %v2426_v27  ;;  %v2418_v57 = vadd.f32 %v4549_v59, %v2417_v61 }
 0x3e0   :  { %v3248_v24 = vpop.f32.mrf.mxu1 }
 0x3e1   :  { %2520 = vst [vmem:[#allocation5 + $0x40] sm:$0xff] %v2418_v57  ;;  %v2429_v13 = vadd.f32 %v3248_v24, %v4549_v59 }
 0x3e2   :  { %v2420_v37 = vpop.f32.mrf.mxu1 }
 0x3e3   :  { %2523 = vst [vmem:[#allocation5 + $0x58] sm:$0xff] %v2429_v13  ;;  %v2421_v25 = vadd.f32 %v4549_v59, %v2420_v37 }
 0x3e4   :  { %v3251_v42 = vpop.f32.mrf.mxu1 }
 0x3e5   :  { %2521 = vst [vmem:[#allocation5 + $0x48] sm:$0xff] %v2421_v25  ;;  %v2442_v48 = vadd.f32 %v3251_v42, %v4549_v59 }
 0x3e6   :  { %v2433_v54 = vpop.f32.mrf.mxu1 }
 0x3e7   :  { %2526 = vst [vmem:[#allocation5 + $0x70] sm:$0xff] %v2442_v48  ;;  %v2434_v29 = vadd.f32 %v4549_v59, %v2433_v54 }
 0x3e8   :  { %v3252_v43 = vpop.f32.mrf.mxu1 }
 0x3e9   :  { %2524 = vst [vmem:[#allocation5 + $0x60] sm:$0xff] %v2434_v29  ;;  %v2445_v47 = vadd.f32 %v3252_v43, %v4549_v59 }
 0x3ea   :  { %v2436_v4 = vpop.f32.mrf.mxu1 }
 0x3eb   :  { %2527 = vst [vmem:[#allocation5 + $0x78] sm:$0xff] %v2445_v47  ;;  %v2437_v14 = vadd.f32 %v4549_v59, %v2436_v4 }
 0x3ec   :  { %v3255_v26 = vpop.f32.mrf.mxu1 }
 0x3ed   :  { %2525 = vst [vmem:[#allocation5 + $0x68] sm:$0xff] %v2437_v14  ;;  %v2458_v2 = vadd.f32 %v3255_v26, %v4549_v59 }
 0x3ee   :  { %v2449_v19 = vpop.f32.mrf.mxu1 }
 0x3ef   :  { %2530 = vst [vmem:[#allocation5 + $0x90] sm:$0xff] %v2458_v2  ;;  %v2450_v56 = vadd.f32 %v4549_v59, %v2449_v19 }
 0x3f0   :  { %v3256_v58 = vpop.f32.mrf.mxu1 }
 0x3f1   :  { %2528 = vst [vmem:[#allocation5 + $0x80] sm:$0xff] %v2450_v56  ;;  %v2461_v45 = vadd.f32 %v3256_v58, %v4549_v59 }
 0x3f2   :  { %v2452_v0 = vpop.f32.mrf.mxu1 }
 0x3f3   :  { %2531 = vst [vmem:[#allocation5 + $0x98] sm:$0xff] %v2461_v45  ;;  %v2453_v31 = vadd.f32 %v4549_v59, %v2452_v0 }
 0x3f4   :  { %v3259_v41 = vpop.f32.mrf.mxu1 }
 0x3f5   :  { %2529 = vst [vmem:[#allocation5 + $0x88] sm:$0xff] %v2453_v31  ;;  %v2474_v5 = vadd.f32 %v3259_v41, %v4549_v59 }
 0x3f6   :  { %v2465_v11 = vpop.f32.mrf.mxu1 }
 0x3f7   :  { %2534 = vst [vmem:[#allocation5 + $0xb0] sm:$0xff] %v2474_v5  ;;  %v2466_v34 = vadd.f32 %v4549_v59, %v2465_v11 }
 0x3f8   :  { %v3260_v28 = vpop.f32.mrf.mxu1 }
 0x3f9   :  { %2532 = vst [vmem:[#allocation5 + $0xa0] sm:$0xff] %v2466_v34  ;;  %v2477_v8 = vadd.f32 %v3260_v28, %v4549_v59 }
 0x3fa   :  { %v2468_v7 = vpop.f32.mrf.mxu1 }
 0x3fb   :  { %2535 = vst [vmem:[#allocation5 + $0xb8] sm:$0xff] %v2477_v8  ;;  %v2469_v44 = vadd.f32 %v4549_v59, %v2468_v7 }
 0x3fc   :  { %v3263_v33 = vpop.f32.mrf.mxu1 }
 0x3fd   :  { %2533 = vst [vmem:[#allocation5 + $0xa8] sm:$0xff] %v2469_v44  ;;  %v2490_v55 = vadd.f32 %v3263_v33, %v4549_v59 }
 0x3fe   :  { %v2481_v51 = vpop.f32.mrf.mxu1 }
 0x3ff   :  { %2538 = vst [vmem:[#allocation5 + $0xd0] sm:$0xff] %v2490_v55  ;;  %v2482_v38 = vadd.f32 %v4549_v59, %v2481_v51 }
 0x400   :  { %v3264_v10 = vpop.f32.mrf.mxu1 }
 0x401   :  { %2536 = vst [vmem:[#allocation5 + $0xc0] sm:$0xff] %v2482_v38  ;;  %v2493_v50 = vadd.f32 %v3264_v10, %v4549_v59 }
 0x402   :  { %v2484_v36 = vpop.f32.mrf.mxu1 }
 0x403   :  { %2539 = vst [vmem:[#allocation5 + $0xd8] sm:$0xff] %v2493_v50  ;;  %v2485_v16 = vadd.f32 %v4549_v59, %v2484_v36 }
 0x404   :  { %v3267_v21 = vpop.f32.mrf.mxu1 }
 0x405   :  { %2537 = vst [vmem:[#allocation5 + $0xc8] sm:$0xff] %v2485_v16  ;;  %v2506_v53 = vadd.f32 %v3267_v21, %v4549_v59 }
 0x406   :  { %v2497_v6 = vpop.f32.mrf.mxu1 }
 0x407   :  { %2542 = vst [vmem:[#allocation5 + $0xf0] sm:$0xff] %v2506_v53  ;;  %v2498_v18 = vadd.f32 %v4549_v59, %v2497_v6 }
 0x408   :  { %v3268_v1 = vpop.f32.mrf.mxu1 }
 0x409   :  { %2540 = vst [vmem:[#allocation5 + $0xe0] sm:$0xff] %v2498_v18  ;;  %v2509_v30 = vadd.f32 %v3268_v1, %v4549_v59 }
 0x40a   :  { %v2500_v46 = vpop.f32.mrf.mxu1 }
 0x40b   :  { %2543 = vst [vmem:[#allocation5 + $0xf8] sm:$0xff] %v2509_v30  ;;  %v2501_v15 = vadd.f32 %v4549_v59, %v2500_v46 }
 0x40d   :  { %2541 = vst [vmem:[#allocation5 + $0xe8] sm:$0xff] %v2501_v15 }
 0x40e   :  { %3419 = shalt.err (!%p3416_p0)
}
 0x40f   :  { %2555 = dma.vmem_to_hbm [thread:$0]  %s2550_s15, 4096, %s4603_s14, [#allocation4], %s3440_s12, %s3440_s12, %s3441_s16  }
 0x410   :  { %3430 = dma.done.wait [#allocation4], 4096  }
 0x411   :  { %3431 = vsyncadd [#allocation4], 4294963200 }
 0x412   :  { %3432 = dma.done.wait [#allocation7], 4096  }
 0x413   :  { %3433 = vsyncadd [#allocation7], 4294963200 }
 0x414   :  { %2574 = vsyncpa [#allocation3], 1 }
 0x415   :  { %2575 = vsyncpa [#allocation4], 1 }
 0x416   :  { %2576 = vsyncpa [#allocation7], 1 }

</bundles_post_ra>
